<compile_context>
chip_gen: v7x
topology: tpu7x:2x2x1
jax: 0.10.0
libtpu: 0.0.40
codegen_flags: <defaults>
</compile_context>

<pallas_src>
import math
import functools

import jax
import jax.numpy as jnp
from jax.experimental import pallas as pl
from jax.experimental.pallas import tpu as pltpu


def _round_up(x, m):
    return ((x + m - 1) // m) * m


# ----------------------------------------------------------------------------
# Capability probes / sizing helpers
# ----------------------------------------------------------------------------

def _probe_kernel(x_ref, o_ref):
    o_ref[...] = x_ref[...] + 1.0


@functools.lru_cache(maxsize=None)
def _single_buffer_mode():
    """pl.Buffered(1) if this JAX supports single-buffered revisited blocks."""
    buffered = getattr(pl, "Buffered", None)
    if buffered is None:
        return None
    try:
        mode = buffered(1)
        fn = pl.pallas_call(
            _probe_kernel,
            out_shape=jax.ShapeDtypeStruct((8, 128), jnp.float32),
            grid=(1,),
            in_specs=[pl.BlockSpec((8, 128), lambda i: (0, 0),
                                   pipeline_mode=mode)],
            out_specs=pl.BlockSpec((8, 128), lambda i: (0, 0)))
        jax.block_until_ready(fn(jnp.zeros((8, 128), jnp.float32)))
        return mode
    except Exception:
        return None


def _pick_row_tile(r, max_tile):
    """Row tile: big for MXU fill, but at least 2 row tiles (v7x megacore)."""
    max_tile = max(8, _round_up(min(int(max_tile), 512), 8))
    if r <= 8:
        return 8
    half = _round_up((r + 1) // 2, 8)
    return int(min(max_tile, half))


def _pick_vmem_limit(need_bytes):
    cap = 64 * 1024 * 1024  # conservative default (v7x per-TC VMEM)
    try:
        cap = int(getattr(pltpu.get_tpu_info(), "vmem_capacity_bytes", cap))
    except Exception:
        pass
    want = max(32 * 1024 * 1024, int(need_bytes * 1.25) + (2 << 20))
    return int(min(want, int(cap * 0.9)))


def _head_vmem_need(tm, ktile, two_f, ow, nk, fc2_split):
    bf16, f32 = 2, 4
    w2_elems = 2 * (two_f // 2) ** 2 if fc2_split else two_f * two_f
    return (2 * tm * ktile * bf16                        # x tile (double buf)
            + (1 if nk == 1 else 2) * ktile * two_f * bf16   # w1 block(s)
            + 2 * tm * 4 * f32                           # proposal boxes tile
            + (2 * two_f + ow) * f32                     # biases
            + (w2_elems + two_f * ow) * bf16             # w2 + wo (resident)
            + 2 * tm * ow * f32                          # output tile
            + tm * two_f * f32                           # FC1 accumulator
            + tm * two_f * (f32 + bf16)                  # h / h16 intermediates
            + tm * ow * f32)                             # raw


def _resident_spec(arr, mode):
    """Constant-index (revisited) block; single-buffered when supported."""
    ndim = arr.ndim
    imap = (lambda i, k: (0, 0)) if ndim == 2 else (lambda i, k: (0,) * ndim)
    if mode is not None:
        return pl.BlockSpec(arr.shape, imap, pipeline_mode=mode)
    return pl.BlockSpec(arr.shape, imap)


# ----------------------------------------------------------------------------
# Fused head Pallas kernel
#   x --K-tiled--> [FC1 accumulate] -> ReLU -> [FC2] -> ReLU -> [predictor]
#     -> softmax(logits), decode(deltas, proposal boxes)
#     -> one lane-dense (TM, 128) output slab
# ----------------------------------------------------------------------------

def _fused_head_kernel(x_ref, boxes_ref, w1_ref, b1_ref, w2_ref, b2_ref,
                       wo_ref, bo_ref, o_ref, acc_ref, *,
                       cls_pad, reg_pad, scale_clamp, fc2_split):
    f32 = jnp.float32
    k = pl.program_id(1)

    @pl.when(k == 0)
    def _init():
        acc_ref[...] = jnp.zeros_like(acc_ref)

    # FC1 partial product for this K tile (bf16 MXU, f32 accumulation).
    acc_ref[...] += jnp.dot(x_ref[...], w1_ref[...], preferred_element_type=f32)

    @pl.when(k == pl.num_programs(1) - 1)
    def _epilogue():
        h = jnp.maximum(acc_ref[...] + b1_ref[...], 0.0)        # (TM, 2F) f32
        h16 = h.astype(w1_ref.dtype)
        b2 = b2_ref[...]
        bo = bo_ref[...]

        if fc2_split:
            # Two dense (F, F) matmuls (production fc_dim): no 50%-zero matmul.
            fdim = w2_ref.shape[1]
            wo_full = wo_ref[...]
            hc = jnp.maximum(
                jnp.dot(h16[:, :fdim], w2_ref[0], preferred_element_type=f32)
                + b2[:, :fdim], 0.0).astype(wo_full.dtype)
            hb = jnp.maximum(
                jnp.dot(h16[:, fdim:], w2_ref[1], preferred_element_type=f32)
                + b2[:, fdim:], 0.0).astype(wo_full.dtype)
            raw = (jnp.dot(hc, wo_full[:fdim], preferred_element_type=f32)
                   + jnp.dot(hb, wo_full[fdim:], preferred_element_type=f32)
                   + bo)
        else:
            # Small fc_dim: one block-diagonal matmul keeps the MXU N dim wide.
            h2 = jnp.maximum(
                jnp.dot(h16, w2_ref[...], preferred_element_type=f32) + b2, 0.0)
            raw = jnp.dot(h2.astype(wo_ref.dtype), wo_ref[...],
                          preferred_element_type=f32) + bo      # (TM, OW)

        tm = raw.shape[0]

        # Class softmax; padded logit columns carry a -1e30 bias -> contribute 0.
        logits = raw[:, :cls_pad]
        m = jnp.max(logits, axis=-1, keepdims=True)
        e = jnp.exp(logits - m)
        scores = e * pl.reciprocal(jnp.sum(e, axis=-1, keepdims=True),
                                   approx=True)

        # Box2BoxTransform.apply_deltas; bbox-reg weight division is already
        # folded into the predictor weights.
        b = boxes_ref[...]                                      # (TM, 4) f32
        widths = b[:, 2:3] - b[:, 0:1]
        heights = b[:, 3:4] - b[:, 1:2]
        ctr_x = b[:, 0:1] + 0.5 * widths
        ctr_y = b[:, 1:2] + 0.5 * heights

        base = 2 * cls_pad
        rp = reg_pad
        dx = raw[:, base:base + rp]
        dy = raw[:, base + rp:base + 2 * rp]
        dw = jnp.minimum(raw[:, base + 2 * rp:base + 3 * rp], scale_clamp)
        dh = jnp.minimum(raw[:, base + 3 * rp:base + 4 * rp], scale_clamp)
        pcx = dx * widths + ctr_x
        pcy = dy * heights + ctr_y
        pw = jnp.exp(dw) * widths
        ph = jnp.exp(dh) * heights

        pieces = [logits, scores,
                  pcx - 0.5 * pw, pcy - 0.5 * ph,
                  pcx + 0.5 * pw, pcy + 0.5 * ph]
        tail = o_ref.shape[-1] - (2 * cls_pad + 4 * rp)
        if tail:
            pieces.append(jnp.zeros((tm, tail), f32))
        o_ref[...] = jnp.concatenate(pieces, axis=-1)           # single vst slab


def fused_head_forward(x, boxes, w1, b1, w2, b2, wo, bo, *,
                       cls_pad, reg_pad, fc2_split, ktile, nk,
                       row_tile=256,
                       scale_clamp=math.log(1000.0 / 16)):
    """x: (R, Din) bf16/f32, boxes: (R, 4) -> (R, OW) f32 output slab."""
    r = x.shape[0]
    two_f = w1.shape[1]
    ow = wo.shape[1]
    d_in_pad = ktile * nk

    tm = _pick_row_tile(r, row_tile)
    r_pad = _round_up(r, tm)

    if x.dtype != jnp.bfloat16:
        x = x.astype(jnp.bfloat16)
    if boxes.dtype != jnp.float32:
        boxes = boxes.astype(jnp.float32)
    if x.shape[1] != d_in_pad:
        x = jnp.pad(x, ((0, 0), (0, d_in_pad - x.shape[1])))
    if r_pad != r:
        # TODO(synk): at production R avoid this copy by letting the last row
        # tile read out-of-bounds instead of padding.
        x = jnp.pad(x, ((0, r_pad - r), (0, 0)))
        boxes = jnp.pad(boxes, ((0, r_pad - r), (0, 0)))

    kernel = functools.partial(
        _fused_head_kernel, cls_pad=cls_pad, reg_pad=reg_pad,
        scale_clamp=float(scale_clamp), fc2_split=fc2_split)

    mode = _single_buffer_mode()
    if nk == 1:
        w1_spec = _resident_spec(w1, mode)           # fully resident weights
    else:
        w1_spec = pl.BlockSpec((ktile, two_f), lambda i, k: (k, 0))

    in_specs = [
        pl.BlockSpec((tm, ktile), lambda i, k: (i, k)),    # x tile
        pl.BlockSpec((tm, 4), lambda i, k: (i, 0)),        # proposal boxes
        w1_spec,
        _resident_spec(b1, mode),
        _resident_spec(w2, mode),
        _resident_spec(b2, mode),
        _resident_spec(wo, mode),
        _resident_spec(bo, mode),
    ]

    need = _head_vmem_need(tm, ktile, two_f, ow, nk, fc2_split)
    vmem_limit = _pick_vmem_limit(need)

    fc2_flops = (4 * (two_f // 2) ** 2) if fc2_split else (2 * two_f * two_f)
    flops = r_pad * (2 * d_in_pad * two_f + fc2_flops + 2 * two_f * ow)
    transcendentals = r_pad * (cls_pad + 2 * reg_pad + 1)
    bytes_accessed = int(x.size * 2 + boxes.size * 4
                         + (w1.size + w2.size + wo.size) * 2
                         + (b1.size + b2.size + bo.size) * 4
                         + r_pad * ow * 4)

    out = pl.pallas_call(
        kernel,
        out_shape=jax.ShapeDtypeStruct((r_pad, ow), jnp.float32),
        grid_spec=pltpu.PrefetchScalarGridSpec(
            num_scalar_prefetch=0,
            grid=(r_pad // tm, nk),
            in_specs=in_specs,
            out_specs=pl.BlockSpec((tm, ow), lambda i, k: (i, 0)),
            scratch_shapes=[pltpu.VMEM((tm, two_f), jnp.float32)],
        ),
        compiler_params=pltpu.CompilerParams(
            dimension_semantics=("parallel", "arbitrary"),
            vmem_limit_bytes=vmem_limit),
        cost_estimate=pl.CostEstimate(
            flops=int(flops),
            transcendentals=int(transcendentals),
            bytes_accessed=bytes_accessed),
    )(x, boxes, w1, b1, w2, b2, wo, bo)
    return out[:r]


# ----------------------------------------------------------------------------
# ROIAlign (ROIAlignV2 / aligned=True)
#   Per-axis sr-averaged bilinear interpolation matrices (computed in XLA,
#   tiny), then a Pallas kernel: one grid step per ROI, the (1,C,H,W) feature
#   block is selected by the scalar-prefetched batch index (re-DMA'd only when
#   the image changes) and contracted with the two interp matrices on the MXU.
# ----------------------------------------------------------------------------

def _axis_interp_matrix(lo, hi, size, p, sr):
    """M[r, p, i] = mean over the sr samples in bin p of the 1-D bilinear
    weight of feature index i; out-of-map samples contribute 0 (ROIAlignV2)."""
    r = lo.shape[0]
    bin_sz = (hi - lo) / p
    t = jnp.arange(p * sr, dtype=jnp.float32)
    pos = jnp.floor(t / sr) + ((t % sr) + 0.5) / sr
    coords = lo[:, None] + pos[None, :] * bin_sz[:, None]            # (R, S)
    valid = ((coords >= -1.0) & (coords <= float(size))).astype(jnp.float32)
    cc = jnp.clip(coords, 0.0, float(size - 1))
    i0f = jnp.floor(cc)
    frac = cc - i0f
    i0 = i0f.astype(jnp.int32)
    i1 = jnp.minimum(i0 + 1, size - 1)
    idx = jnp.arange(size, dtype=jnp.int32)
    m = ((1.0 - frac)[..., None] * (i0[..., None] == idx).astype(jnp.float32)
         + frac[..., None] * (i1[..., None] == idx).astype(jnp.float32))
    m = m * valid[..., None]
    return m.reshape(r, p, sr, size).mean(axis=2)                    # (R, P, size)


def _roi_interp_matrices(boxes, hw, p, spatial_scale, sampling_ratio):
    h, w = hw
    x1 = boxes[:, 0] * spatial_scale - 0.5
    y1 = boxes[:, 1] * spatial_scale - 0.5
    x2 = boxes[:, 2] * spatial_scale - 0.5
    y2 = boxes[:, 3] * spatial_scale - 0.5
    wy = _axis_interp_matrix(y1, y2, h, p, sampling_ratio)
    wx = _axis_interp_matrix(x1, x2, w, p, sampling_ratio)
    return wy, wx


def _roi_align_kernel(bidx_ref, feat_ref, wy_ref, wx_ref, o_ref):
    del bidx_ref  # only used by the index_maps
    f = feat_ref[0].astype(jnp.float32)                       # (C, H, W)
    c = f.shape[0]
    wy = jnp.broadcast_to(wy_ref[0][None], (c,) + wy_ref.shape[1:])   # (C,P,H)
    wx = jnp.broadcast_to(wx_ref[0][None], (c,) + wx_ref.shape[1:])   # (C,P,W)
    t = jnp.einsum('cph,chw->cpw', wy, f, preferred_element_type=jnp.float32)
    o = jnp.einsum('cpw,cqw->cpq', t, wx, preferred_element_type=jnp.float32)
    o_ref[0] = o.astype(o_ref.dtype)


def roi_align_pallas(features, batch_idx, wy, wx, out_dtype=jnp.bfloat16):
    """features: (N, C, H, W); batch_idx: (R,) int32; wy/wx: (R, P, H/W).
    Returns (R, C, P, P) in `out_dtype` (bf16: fed straight to the head)."""
    n, c, h, w = features.shape
    r, p, _ = wy.shape
    return pl.pallas_call(
        _roi_align_kernel,
        out_shape=jax.ShapeDtypeStruct((r, c, p, p), out_dtype),
        grid_spec=pltpu.PrefetchScalarGridSpec(
            num_scalar_prefetch=1,
            grid=(r,),
            in_specs=[
                pl.BlockSpec((1, c, h, w), lambda i, bidx: (bidx[i], 0, 0, 0)),
                pl.BlockSpec((1, p, h), lambda i, bidx: (i, 0, 0)),
                pl.BlockSpec((1, p, w), lambda i, bidx: (i, 0, 0)),
            ],
            out_specs=pl.BlockSpec((1, c, p, p), lambda i, bidx: (i, 0, 0, 0)),
        ),
        compiler_params=pltpu.CompilerParams(
            dimension_semantics=("arbitrary",)),
    )(batch_idx, features, wy, wx)


# ----------------------------------------------------------------------------
# StandardROIHeads (inference) wrapper
# ----------------------------------------------------------------------------

class StandardROIHeadsPallas:
    def __init__(self, key, *, in_channels=8, pooler_resolution=4,
                 sampling_ratio=2, feature_stride=4, fc_dim=128,
                 num_classes=7, cls_agnostic_bbox_reg=False,
                 bbox_reg_weights=(10.0, 10.0, 5.0, 5.0),
                 row_tile=256, k_tile=2048):
        self.pooler_resolution = pooler_resolution
        self.sampling_ratio = sampling_ratio
        self.spatial_scale = 1.0 / feature_stride
        self.num_classes = num_classes
        self.n_reg = 1 if cls_agnostic_bbox_reg else num_classes
        self.row_tile = row_tile

        d_in = in_channels * pooler_resolution * pooler_resolution
        fd = fc_dim
        k1 = num_classes + 1
        self.cls_pad = _round_up(k1, 8)
        self.reg_pad = _round_up(self.n_reg, 8)
        used = 2 * self.cls_pad + 4 * self.reg_pad
        self.out_width = _round_up(max(used, 128), 128)

        # K (d_in) tiling: keeps the streamed w1 blocks ~<= k_tile rows so the
        # kernel fits v7x's 64 MiB VMEM at production d_in; 1 step at toy sizes.
        d_in_aligned = _round_up(d_in, 128)
        k_tile = max(128, _round_up(k_tile, 128))
        self.nk = max(1, -(-d_in_aligned // k_tile))
        self.ktile = _round_up(-(-d_in_aligned // self.nk), 128)
        d_in_pad = self.nk * self.ktile

        # Block-diag FC2 only when it does not waste FLOPs (F <= 128).
        self.fc2_split = fd > 128

        ks = jax.random.split(key, 6)

        def lin(k, i, o, std):
            return (jax.random.normal(k, (i, o), jnp.float32) * std,
                    jnp.zeros((o,), jnp.float32))

        cls_w1, cls_b1 = lin(ks[0], d_in, fd, 0.02)
        cls_w2, cls_b2 = lin(ks[1], fd, fd, 0.02)
        cls_wo, cls_bo = lin(ks[2], fd, k1, 0.01)
        box_w1, box_b1 = lin(ks[3], d_in, fd, 0.02)
        box_w2, box_b2 = lin(ks[4], fd, fd, 0.02)
        box_wo, box_bo = lin(ks[5], fd, self.n_reg * 4, 0.001)
        self._ref_params = dict(
            cls_w1=cls_w1, cls_b1=cls_b1, cls_w2=cls_w2, cls_b2=cls_b2,
            cls_wo=cls_wo, cls_bo=cls_bo, box_w1=box_w1, box_b1=box_b1,
            box_w2=box_w2, box_b2=box_b2, box_wo=box_wo, box_bo=box_bo)

        # FC1: branches concatenated on the output dim, rows padded to K tiles.
        w1 = jnp.concatenate([cls_w1, box_w1], axis=1)
        if d_in_pad != d_in:
            w1 = jnp.pad(w1, ((0, d_in_pad - d_in), (0, 0)))
        b1 = jnp.concatenate([cls_b1, box_b1])

        # FC2: block-diagonal for small F, stacked dense (F,F) pair otherwise.
        if self.fc2_split:
            w2 = jnp.stack([cls_w2, box_w2], axis=0)              # (2, F, F)
        else:
            w2 = jnp.zeros((2 * fd, 2 * fd), jnp.float32)
            w2 = w2.at[:fd, :fd].set(cls_w2).at[fd:, fd:].set(box_w2)
        b2 = jnp.concatenate([cls_b2, box_b2])

        # Packed predictor; raw/output column layout:
        #   [0, cls_pad)                  class logits (pad cols biased -1e30)
        #   [cls_pad, 2*cls_pad)          softmax scores slot (unused in raw)
        #   [2*cls_pad + c*reg_pad + k]   delta coord c of class k, already
        #                                 divided by the bbox-reg weight.
        wo = jnp.zeros((2 * fd, self.out_width), jnp.float32)
        bo = jnp.zeros((self.out_width,), jnp.float32)
        wo = wo.at[:fd, :k1].set(cls_wo)
        bo = bo.at[:k1].set(cls_bo)
        if self.cls_pad > k1:
            bo = bo.at[k1:self.cls_pad].set(-1e30)   # pad logits -> softmax 0
        base = 2 * self.cls_pad
        for coord in range(4):
            dst = base + coord * self.reg_pad
            bw = float(bbox_reg_weights[coord])
            wo = wo.at[fd:, dst:dst + self.n_reg].set(box_wo[:, coord::4] / bw)
            bo = bo.at[dst:dst + self.n_reg].set(box_bo[coord::4] / bw)

        # bf16 operands for the MXU; biases stay f32 (f32 epilogue).
        self.w1 = w1.astype(jnp.bfloat16)
        self.w2 = w2.astype(jnp.bfloat16)
        self.wo = wo.astype(jnp.bfloat16)
        self.b1 = b1.reshape(1, -1)
        self.b2 = b2.reshape(1, -1)
        self.bo = bo.reshape(1, -1)

    def forward(self, features, proposals):
        """features: dict name -> (N, C, H, W); proposals: list of (Ri, 4).
        Returns (list of per-image dicts with decoded boxes / scores, {})."""
        feat = list(features.values())[0]                 # single in_feature
        n, c, h, w = feat.shape
        counts = [int(p.shape[0]) for p in proposals]
        boxes = jnp.concatenate(proposals, axis=0).astype(jnp.float32)
        batch_idx = jnp.concatenate([
            jnp.full((cnt,), i, jnp.int32) for i, cnt in enumerate(counts)])

        wy, wx = _roi_interp_matrices(boxes, (h, w), self.pooler_resolution,
                                      self.spatial_scale, self.sampling_ratio)

        try:
            pooled = roi_align_pallas(feat, batch_idx, wy, wx)
            pooled = jax.block_until_ready(pooled)        # (R, C, P, P) bf16
        except Exception:
            # TODO(synk): windowed-DMA Pallas ROIAlign for production maps; this
            # per-image einsum fallback still avoids per-ROI feature replication.
            parts, s = [], 0
            for i, cnt in enumerate(counts):
                t = jnp.einsum('rph,chw->rcpw', wy[s:s + cnt], feat[i])
                parts.append(jnp.einsum('rcpw,rqw->rcpq', t,
                                        wx[s:s + cnt]).astype(jnp.bfloat16))
                s += cnt
            pooled = jnp.concatenate(parts, axis=0)

        x = pooled.reshape(pooled.shape[0], -1)           # (R, C*P*P) bf16

        out = fused_head_forward(
            x, boxes, self.w1, self.b1, self.w2, self.b2, self.wo, self.bo,
            cls_pad=self.cls_pad, reg_pad=self.reg_pad,
            fc2_split=self.fc2_split, ktile=self.ktile, nk=self.nk,
            row_tile=self.row_tile)                       # (R, OW)

        k1 = self.num_classes + 1
        cls_pad, reg_pad, nr = self.cls_pad, self.reg_pad, self.n_reg
        scores = out[:, cls_pad:cls_pad + k1]
        base = 2 * cls_pad
        coords = [out[:, base + cc * reg_pad: base + cc * reg_pad + nr]
                  for cc in range(4)]
        pred_boxes = jnp.stack(coords, axis=-1).reshape(out.shape[0], nr * 4)

        # TODO(synk): fast_rcnn_inference (score threshold, per-class NMS,
        # top-k, box clipping) and the training path (label_and_sample_proposals
        # / FastRCNNOutputs.losses) have no clean Pallas equivalent here.
        results, start = [], 0
        for cnt in counts:
            results.append({"pred_boxes": pred_boxes[start:start + cnt],
                            "scores": scores[start:start + cnt]})
            start += cnt
        return results, {}


# ----------------------------------------------------------------------------
# main
# ----------------------------------------------------------------------------

if __name__ == "__main__":
    key = jax.random.PRNGKey(0)
    k_feat, k_box, k_param = jax.random.split(key, 3)

    N, C, H, W = 2, 8, 16, 16          # feature map, stride 4 -> 64x64 image
    R_per_img = 8
    NUM_CLASSES = 7
    R_total = N * R_per_img

    features = {"p3": jax.random.normal(k_feat, (N, C, H, W), jnp.float32)}

    kb = jax.random.split(k_box, N)
    proposals = []
    for i in range(N):
        xy = jax.random.uniform(kb[i], (R_per_img, 2), minval=0.0, maxval=40.0)
        wh = jax.random.uniform(jax.random.fold_in(kb[i], 1), (R_per_img, 2),
                                minval=8.0, maxval=24.0)
        proposals.append(jnp.concatenate([xy, xy + wh], axis=1))

    heads = StandardROIHeadsPallas(
        k_param, in_channels=C, pooler_resolution=4, sampling_ratio=2,
        feature_stride=4, fc_dim=128, num_classes=NUM_CLASSES,
        cls_agnostic_bbox_reg=False, row_tile=256)

    results, losses = heads.forward(features, proposals)
    for r in results:
        jax.block_until_ready(r["pred_boxes"])
        jax.block_until_ready(r["scores"])

    assert results[0]["scores"].shape == (R_per_img, NUM_CLASSES + 1)
    assert results[0]["pred_boxes"].shape == (R_per_img, NUM_CLASSES * 4)
    got_scores = jnp.concatenate([r["scores"] for r in results], axis=0)
    got_boxes = jnp.concatenate([r["pred_boxes"] for r in results], axis=0)
    assert bool(jnp.all(jnp.isfinite(got_scores)))
    assert bool(jnp.all(jnp.isfinite(got_boxes)))
    assert bool(jnp.all(jnp.abs(got_scores.sum(-1) - 1.0) < 0.05))

    # ---- loose numerical check against a pure-JAX f32 reference -------------
    feat = features["p3"]
    boxes_all = jnp.concatenate(proposals, axis=0)
    wy, wx = _roi_interp_matrices(boxes_all, (H, W), heads.pooler_resolution,
                                  heads.spatial_scale, heads.sampling_ratio)
    parts, s = [], 0
    for i in range(N):
        cnt = proposals[i].shape[0]
        t = jnp.einsum('rph,chw->rcpw', wy[s:s + cnt], feat[i])
        parts.append(jnp.einsum('rcpw,rqw->rcpq', t, wx[s:s + cnt]))
        s += cnt
    xr = jnp.concatenate(parts, axis=0).reshape(R_total, -1)

    p = heads._ref_params

    def mlp(xin, w1, b1, w2, b2, wo, bo):
        hh = jnp.maximum(xin @ w1 + b1, 0.0)
        hh = jnp.maximum(hh @ w2 + b2, 0.0)
        return hh @ wo + bo

    logits_ref = mlp(xr, p["cls_w1"], p["cls_b1"], p["cls_w2"], p["cls_b2"],
                     p["cls_wo"], p["cls_bo"])
    scores_ref = jax.nn.softmax(logits_ref, axis=-1)
    deltas_ref = mlp(xr, p["box_w1"], p["box_b1"], p["box_w2"], p["box_b2"],
                     p["box_wo"], p["box_bo"])

    bw = boxes_all[:, 2] - boxes_all[:, 0]
    bh = boxes_all[:, 3] - boxes_all[:, 1]
    cx = boxes_all[:, 0] + 0.5 * bw
    cy = boxes_all[:, 1] + 0.5 * bh
    clamp = math.log(1000.0 / 16)
    dx = deltas_ref[:, 0::4] / 10.0
    dy = deltas_ref[:, 1::4] / 10.0
    dwv = jnp.minimum(deltas_ref[:, 2::4] / 5.0, clamp)
    dhv = jnp.minimum(deltas_ref[:, 3::4] / 5.0, clamp)
    pcx = dx * bw[:, None] + cx[:, None]
    pcy = dy * bh[:, None] + cy[:, None]
    pw = jnp.exp(dwv) * bw[:, None]
    ph = jnp.exp(dhv) * bh[:, None]
    ref_boxes = jnp.stack([pcx - 0.5 * pw, pcy - 0.5 * ph,
                           pcx + 0.5 * pw, pcy + 0.5 * ph],
                          axis=-1).reshape(R_total, -1)

    assert float(jnp.max(jnp.abs(got_scores - scores_ref))) < 0.03
    assert float(jnp.max(jnp.abs(got_boxes - ref_boxes))) < 0.25

    print("KERNEL_OK")
</pallas_src>

<mosaic_0001>
module attributes {stable_mosaic.version = 11 : i64} {
  func.func @_roi_align_kernel(%arg0: i32, %arg1: memref<16xi32, #tpu.memory_space<smem>>, %arg2: memref<1x8x16x16xf32, #tpu.memory_space<vmem>>, %arg3: memref<1x4x16xf32, #tpu.memory_space<vmem>>, %arg4: memref<1x4x16xf32, #tpu.memory_space<vmem>>, %arg5: memref<1x8x4x4xbf16, #tpu.memory_space<vmem>>) attributes {dimension_semantics = [#tpu.dimension_semantics<arbitrary>], iteration_bounds = array<i64: 16>, scalar_prefetch = 1 : i64, scratch_operands = 0 : i64, tpu.core_type = #tpu.core_type<tc>, window_params = [{transform_indices = @transform_0, window_bounds = array<i64: 1, 8, 16, 16>}, {transform_indices = @transform_1, window_bounds = array<i64: 1, 4, 16>}, {transform_indices = @transform_2, window_bounds = array<i64: 1, 4, 16>}, {transform_indices = @transform_3, window_bounds = array<i64: 1, 8, 4, 4>}]} {
    %c0 = arith.constant 0 : index
    %c0_0 = arith.constant 0 : index
    %c0_1 = arith.constant 0 : index
    %c0_2 = arith.constant 0 : index
    %0 = vector.load %arg2[%c0, %c0_0, %c0_1, %c0_2] : memref<1x8x16x16xf32, #tpu.memory_space<vmem>>, vector<1x8x16x16xf32>
    %1 = vector.shape_cast %0 : vector<1x8x16x16xf32> to vector<8x16x16xf32>
    %c0_3 = arith.constant 0 : index
    %c0_4 = arith.constant 0 : index
    %c0_5 = arith.constant 0 : index
    %2 = vector.load %arg3[%c0_3, %c0_4, %c0_5] : memref<1x4x16xf32, #tpu.memory_space<vmem>>, vector<1x4x16xf32>
    %3 = vector.shape_cast %2 : vector<1x4x16xf32> to vector<4x16xf32>
    %4 = vector.shape_cast %3 : vector<4x16xf32> to vector<1x4x16xf32>
    %5 = vector.shape_cast %4 : vector<1x4x16xf32> to vector<1x4x16xf32>
    %6 = vector.broadcast %5 : vector<1x4x16xf32> to vector<8x4x16xf32>
    %c0_6 = arith.constant 0 : index
    %c0_7 = arith.constant 0 : index
    %c0_8 = arith.constant 0 : index
    %7 = vector.load %arg4[%c0_6, %c0_7, %c0_8] : memref<1x4x16xf32, #tpu.memory_space<vmem>>, vector<1x4x16xf32>
    %8 = vector.shape_cast %7 : vector<1x4x16xf32> to vector<4x16xf32>
    %9 = vector.shape_cast %8 : vector<4x16xf32> to vector<1x4x16xf32>
    %10 = vector.shape_cast %9 : vector<1x4x16xf32> to vector<1x4x16xf32>
    %11 = vector.broadcast %10 : vector<1x4x16xf32> to vector<8x4x16xf32>
    "tpu.trace_start"() <{level = 10 : i32, message = "cph,chw->cpw"}> : () -> ()
    %cst = arith.constant dense<0.000000e+00> : vector<8x4x16xf32>
    %12 = tpu.matmul %6, %1, %cst {dimension_numbers = #tpu.dot_dimension_numbers<[2], [1], [1], [2], [0, 0, 0, 1, 1, 2], [0], [0]>} : vector<8x4x16xf32>, vector<8x16x16xf32>, vector<8x4x16xf32> -> vector<8x4x16xf32>
    "tpu.trace_stop"() : () -> ()
    "tpu.trace_start"() <{level = 10 : i32, message = "cpw,cqw->cpq"}> : () -> ()
    %cst_9 = arith.constant dense<0.000000e+00> : vector<8x4x4xf32>
    %13 = tpu.matmul %12, %11, %cst_9 {dimension_numbers = #tpu.dot_dimension_numbers<[2], [2], [1], [1], [0, 0, 0, 1, 1, 1], [0], [0]>} : vector<8x4x16xf32>, vector<8x4x16xf32>, vector<8x4x4xf32> -> vector<8x4x4xf32>
    "tpu.trace_stop"() : () -> ()
    %14 = arith.truncf %13 : vector<8x4x4xf32> to vector<8x4x4xbf16>
    %c0_10 = arith.constant 0 : index
    %c0_11 = arith.constant 0 : index
    %c0_12 = arith.constant 0 : index
    %c0_13 = arith.constant 0 : index
    %15 = vector.load %arg5[%c0_10, %c0_11, %c0_12, %c0_13] : memref<1x8x4x4xbf16, #tpu.memory_space<vmem>>, vector<1x8x4x4xbf16>
    %16 = vector.shape_cast %15 : vector<1x8x4x4xbf16> to vector<8x4x4xbf16>
    %17 = vector.shape_cast %14 : vector<8x4x4xbf16> to vector<1x8x4x4xbf16>
    tpu.vector_store %arg5[%c0_10, %c0_11, %c0_12, %c0_13], %17 {strides = array<i32>} : memref<1x8x4x4xbf16, #tpu.memory_space<vmem>>, vector<1x8x4x4xbf16>,
    return
  }
  func.func @transform_0(%arg0: i32, %arg1: memref<16xi32, #tpu.memory_space<smem>>) -> (i32, i32, i32, i32) {
    %0 = arith.index_cast %arg0 : i32 to index
    %1 = memref.load %arg1[%0] : memref<16xi32, #tpu.memory_space<smem>>
    %c0_i32 = arith.constant 0 : i32
    %c0_i32_0 = arith.constant 0 : i32
    %c0_i32_1 = arith.constant 0 : i32
    %c0_i32_2 = arith.constant 0 : i32
    return %1, %c0_i32, %c0_i32_0, %c0_i32_1 : i32, i32, i32, i32
  }
  func.func @transform_1(%arg0: i32, %arg1: memref<16xi32, #tpu.memory_space<smem>>) -> (i32, i32, i32) {
    %c0_i32 = arith.constant 0 : i32
    %c0_i32_0 = arith.constant 0 : i32
    %c0_i32_1 = arith.constant 0 : i32
    return %arg0, %c0_i32, %c0_i32_0 : i32, i32, i32
  }
  func.func @transform_2(%arg0: i32, %arg1: memref<16xi32, #tpu.memory_space<smem>>) -> (i32, i32, i32) {
    %c0_i32 = arith.constant 0 : i32
    %c0_i32_0 = arith.constant 0 : i32
    %c0_i32_1 = arith.constant 0 : i32
    return %arg0, %c0_i32, %c0_i32_0 : i32, i32, i32
  }
  func.func @transform_3(%arg0: i32, %arg1: memref<16xi32, #tpu.memory_space<smem>>) -> (i32, i32, i32, i32) {
    %c0_i32 = arith.constant 0 : i32
    %c0_i32_0 = arith.constant 0 : i32
    %c0_i32_1 = arith.constant 0 : i32
    %c0_i32_2 = arith.constant 0 : i32
    return %arg0, %c0_i32, %c0_i32_0, %c0_i32_1 : i32, i32, i32, i32
  }
}

module attributes {stable_mosaic.version = 11 : i64} {
  func.func @_probe_kernel(%arg0: i32, %arg1: memref<8x128xf32, #tpu.memory_space<vmem>>, %arg2: memref<8x128xf32, #tpu.memory_space<vmem>>) attributes {dimension_semantics = [#tpu.dimension_semantics<arbitrary>], iteration_bounds = array<i64: 1>, scalar_prefetch = 0 : i64, scratch_operands = 0 : i64, tpu.core_type = #tpu.core_type<tc>, window_params = [{pipeline_mode = #tpu.pipeline_mode<synchronous>, transform_indices = @transform_0, window_bounds = array<i64: 8, 128>}, {pipeline_mode = #tpu.pipeline_mode<synchronous>, transform_indices = @transform_1, window_bounds = array<i64: 8, 128>}]} {
    %c0 = arith.constant 0 : index
    %c0_0 = arith.constant 0 : index
    %0 = vector.load %arg1[%c0, %c0_0] : memref<8x128xf32, #tpu.memory_space<vmem>>, vector<8x128xf32>
    %cst = arith.constant 1.000000e+00 : f32
    %1 = vector.broadcast %cst : f32 to vector<8x128xf32>
    %2 = arith.addf %0, %1 : vector<8x128xf32>
    %c0_1 = arith.constant 0 : index
    %c0_2 = arith.constant 0 : index
    %3 = vector.load %arg2[%c0_1, %c0_2] : memref<8x128xf32, #tpu.memory_space<vmem>>, vector<8x128xf32>
    tpu.vector_store %arg2[%c0_1, %c0_2], %2 {strides = array<i32>} : memref<8x128xf32, #tpu.memory_space<vmem>>, vector<8x128xf32>,
    return
  }
  func.func @transform_0(%arg0: i32) -> (i32, i32) {
    %c0_i32 = arith.constant 0 : i32
    %c0_i32_0 = arith.constant 0 : i32
    %c0_i32_1 = arith.constant 0 : i32
    return %c0_i32, %c0_i32_0 : i32, i32
  }
  func.func @transform_1(%arg0: i32) -> (i32, i32) {
    %c0_i32 = arith.constant 0 : i32
    %c0_i32_0 = arith.constant 0 : i32
    %c0_i32_1 = arith.constant 0 : i32
    return %c0_i32, %c0_i32_0 : i32, i32
  }
}

module attributes {stable_mosaic.version = 11 : i64} {
  func.func @_fused_head_kernel(%arg0: i32, %arg1: i32, %arg2: memref<8x128xbf16, #tpu.memory_space<vmem>>, %arg3: memref<8x4xf32, #tpu.memory_space<vmem>>, %arg4: memref<128x256xbf16, #tpu.memory_space<vmem>>, %arg5: memref<1x256xf32, #tpu.memory_space<vmem>>, %arg6: memref<256x256xbf16, #tpu.memory_space<vmem>>, %arg7: memref<1x256xf32, #tpu.memory_space<vmem>>, %arg8: memref<256x128xbf16, #tpu.memory_space<vmem>>, %arg9: memref<1x128xf32, #tpu.memory_space<vmem>>, %arg10: memref<8x128xf32, #tpu.memory_space<vmem>>, %arg11: memref<8x256xf32, #tpu.memory_space<vmem>>) attributes {dimension_semantics = [#tpu.dimension_semantics<parallel>, #tpu.dimension_semantics<arbitrary>], iteration_bounds = array<i64: 2, 1>, scalar_prefetch = 0 : i64, scratch_operands = 1 : i64, tpu.core_type = #tpu.core_type<tc>, window_params = [{transform_indices = @transform_0, window_bounds = array<i64: 8, 128>}, {transform_indices = @transform_1, window_bounds = array<i64: 8, 4>}, {pipeline_mode = #tpu.pipeline_mode<synchronous>, transform_indices = @transform_2, window_bounds = array<i64: 128, 256>}, {pipeline_mode = #tpu.pipeline_mode<synchronous>, transform_indices = @transform_3, window_bounds = array<i64: 1, 256>}, {pipeline_mode = #tpu.pipeline_mode<synchronous>, transform_indices = @transform_4, window_bounds = array<i64: 256, 256>}, {pipeline_mode = #tpu.pipeline_mode<synchronous>, transform_indices = @transform_5, window_bounds = array<i64: 1, 256>}, {pipeline_mode = #tpu.pipeline_mode<synchronous>, transform_indices = @transform_6, window_bounds = array<i64: 256, 128>}, {pipeline_mode = #tpu.pipeline_mode<synchronous>, transform_indices = @transform_7, window_bounds = array<i64: 1, 128>}, {transform_indices = @transform_8, window_bounds = array<i64: 8, 128>}]} {
    %c0_i32 = arith.constant 0 : i32
    %0 = arith.cmpi eq, %arg1, %c0_i32 : i32
    %1 = arith.extui %0 : i1 to i32
    %c0_i32_0 = arith.constant 0 : i32
    %2 = arith.cmpi ne, %1, %c0_i32_0 : i32
    scf.if %2 {
      %cst_10 = arith.constant 0.000000e+00 : f32
      %12 = vector.broadcast %cst_10 : f32 to vector<8x256xf32>
      %c0_11 = arith.constant 0 : index
      %c0_12 = arith.constant 0 : index
      %13 = vector.load %arg11[%c0_11, %c0_12] : memref<8x256xf32, #tpu.memory_space<vmem>>, vector<8x256xf32>
      tpu.vector_store %arg11[%c0_11, %c0_12], %12 {strides = array<i32>} : memref<8x256xf32, #tpu.memory_space<vmem>>, vector<8x256xf32>,
    } else {
    }
    %c0 = arith.constant 0 : index
    %c0_1 = arith.constant 0 : index
    %3 = vector.load %arg11[%c0, %c0_1] : memref<8x256xf32, #tpu.memory_space<vmem>>, vector<8x256xf32>
    %c0_2 = arith.constant 0 : index
    %c0_3 = arith.constant 0 : index
    %4 = vector.load %arg2[%c0_2, %c0_3] : memref<8x128xbf16, #tpu.memory_space<vmem>>, vector<8x128xbf16>
    %c0_4 = arith.constant 0 : index
    %c0_5 = arith.constant 0 : index
    %5 = vector.load %arg4[%c0_4, %c0_5] : memref<128x256xbf16, #tpu.memory_space<vmem>>, vector<128x256xbf16>
    %cst = arith.constant dense<0.000000e+00> : vector<8x256xf32>
    %6 = tpu.matmul %4, %5, %cst {dimension_numbers = #tpu.dot_dimension_numbers<[1], [0], [0], [1], [0, 0, 1, 1], [], []>} : vector<8x128xbf16>, vector<128x256xbf16>, vector<8x256xf32> -> vector<8x256xf32>
    %7 = arith.addf %3, %6 : vector<8x256xf32>
    %c0_6 = arith.constant 0 : index
    %c0_7 = arith.constant 0 : index
    %8 = vector.load %arg11[%c0_6, %c0_7] : memref<8x256xf32, #tpu.memory_space<vmem>>, vector<8x256xf32>
    tpu.vector_store %arg11[%c0_6, %c0_7], %7 {strides = array<i32>} : memref<8x256xf32, #tpu.memory_space<vmem>>, vector<8x256xf32>,
    %c0_i32_8 = arith.constant 0 : i32
    %9 = arith.cmpi eq, %arg1, %c0_i32_8 : i32
    %10 = arith.extui %9 : i1 to i32
    %c0_i32_9 = arith.constant 0 : i32
    %11 = arith.cmpi ne, %10, %c0_i32_9 : i32
    scf.if %11 {
      %c0_10 = arith.constant 0 : index
      %c0_11 = arith.constant 0 : index
      %12 = vector.load %arg11[%c0_10, %c0_11] : memref<8x256xf32, #tpu.memory_space<vmem>>, vector<8x256xf32>
      %c0_12 = arith.constant 0 : index
      %c0_13 = arith.constant 0 : index
      %13 = vector.load %arg5[%c0_12, %c0_13] : memref<1x256xf32, #tpu.memory_space<vmem>>, vector<1x256xf32>
      %14 = vector.broadcast %13 : vector<1x256xf32> to vector<8x256xf32>
      %15 = arith.addf %12, %14 : vector<8x256xf32>
      %cst_14 = arith.constant 0.000000e+00 : f32
      %16 = vector.broadcast %cst_14 : f32 to vector<8x256xf32>
      %17 = arith.maximumf %15, %16 : vector<8x256xf32>
      %18 = arith.truncf %17 : vector<8x256xf32> to vector<8x256xbf16>
      %c0_15 = arith.constant 0 : index
      %c0_16 = arith.constant 0 : index
      %19 = vector.load %arg7[%c0_15, %c0_16] : memref<1x256xf32, #tpu.memory_space<vmem>>, vector<1x256xf32>
      %c0_17 = arith.constant 0 : index
      %c0_18 = arith.constant 0 : index
      %20 = vector.load %arg9[%c0_17, %c0_18] : memref<1x128xf32, #tpu.memory_space<vmem>>, vector<1x128xf32>
      %c0_19 = arith.constant 0 : index
      %c0_20 = arith.constant 0 : index
      %21 = vector.load %arg6[%c0_19, %c0_20] : memref<256x256xbf16, #tpu.memory_space<vmem>>, vector<256x256xbf16>
      %cst_21 = arith.constant dense<0.000000e+00> : vector<8x256xf32>
      %22 = tpu.matmul %18, %21, %cst_21 {dimension_numbers = #tpu.dot_dimension_numbers<[1], [0], [0], [1], [0, 0, 1, 1], [], []>} : vector<8x256xbf16>, vector<256x256xbf16>, vector<8x256xf32> -> vector<8x256xf32>
      %23 = vector.broadcast %19 : vector<1x256xf32> to vector<8x256xf32>
      %24 = arith.addf %22, %23 : vector<8x256xf32>
      %cst_22 = arith.constant 0.000000e+00 : f32
      %25 = vector.broadcast %cst_22 : f32 to vector<8x256xf32>
      %26 = arith.maximumf %24, %25 : vector<8x256xf32>
      %27 = arith.truncf %26 : vector<8x256xf32> to vector<8x256xbf16>
      %c0_23 = arith.constant 0 : index
      %c0_24 = arith.constant 0 : index
      %28 = vector.load %arg8[%c0_23, %c0_24] : memref<256x128xbf16, #tpu.memory_space<vmem>>, vector<256x128xbf16>
      %cst_25 = arith.constant dense<0.000000e+00> : vector<8x128xf32>
      %29 = tpu.matmul %27, %28, %cst_25 {dimension_numbers = #tpu.dot_dimension_numbers<[1], [0], [0], [1], [0, 0, 1, 1], [], []>} : vector<8x256xbf16>, vector<256x128xbf16>, vector<8x128xf32> -> vector<8x128xf32>
      %30 = vector.broadcast %20 : vector<1x128xf32> to vector<8x128xf32>
      %31 = arith.addf %29, %30 : vector<8x128xf32>
      %32 = vector.extract_strided_slice %31 {offsets = [0, 0], sizes = [8, 8], strides = [1, 1]} : vector<8x128xf32> to vector<8x8xf32>
      %cst_26 = arith.constant dense<0xFF800000> : vector<8xf32>
      %33 = vector.multi_reduction <maximumf>, %32, %cst_26 [1] : vector<8x8xf32> to vector<8xf32>
      %34 = vector.shape_cast %33 : vector<8xf32> to vector<8x1xf32>
      %35 = vector.broadcast %34 : vector<8x1xf32> to vector<8x8xf32>
      %36 = arith.subf %32, %35 : vector<8x8xf32>
      %37 = math.exp %36 : vector<8x8xf32>
      %cst_27 = arith.constant dense<0.000000e+00> : vector<8xf32>
      %38 = vector.multi_reduction <add>, %37, %cst_27 [1] : vector<8x8xf32> to vector<8xf32>
      %39 = vector.shape_cast %38 : vector<8xf32> to vector<8x1xf32>
      %40 = tpu.reciprocal %39 {approx = true} : vector<8x1xf32> -> vector<8x1xf32>
      %41 = vector.broadcast %40 : vector<8x1xf32> to vector<8x8xf32>
      %42 = arith.mulf %37, %41 : vector<8x8xf32>
      %c0_28 = arith.constant 0 : index
      %c0_29 = arith.constant 0 : index
      %43 = vector.load %arg3[%c0_28, %c0_29] : memref<8x4xf32, #tpu.memory_space<vmem>>, vector<8x4xf32>
      %44 = vector.extract_strided_slice %43 {offsets = [0, 2], sizes = [8, 1], strides = [1, 1]} : vector<8x4xf32> to vector<8x1xf32>
      %45 = vector.extract_strided_slice %43 {offsets = [0, 0], sizes = [8, 1], strides = [1, 1]} : vector<8x4xf32> to vector<8x1xf32>
      %46 = arith.subf %44, %45 : vector<8x1xf32>
      %47 = vector.extract_strided_slice %43 {offsets = [0, 3], sizes = [8, 1], strides = [1, 1]} : vector<8x4xf32> to vector<8x1xf32>
      %48 = vector.extract_strided_slice %43 {offsets = [0, 1], sizes = [8, 1], strides = [1, 1]} : vector<8x4xf32> to vector<8x1xf32>
      %49 = arith.subf %47, %48 : vector<8x1xf32>
      %50 = vector.extract_strided_slice %43 {offsets = [0, 0], sizes = [8, 1], strides = [1, 1]} : vector<8x4xf32> to vector<8x1xf32>
      %cst_30 = arith.constant 5.000000e-01 : f32
      %51 = vector.broadcast %cst_30 : f32 to vector<8x1xf32>
      %52 = arith.mulf %51, %46 : vector<8x1xf32>
      %53 = arith.addf %50, %52 : vector<8x1xf32>
      %54 = vector.extract_strided_slice %43 {offsets = [0, 1], sizes = [8, 1], strides = [1, 1]} : vector<8x4xf32> to vector<8x1xf32>
      %cst_31 = arith.constant 5.000000e-01 : f32
      %55 = vector.broadcast %cst_31 : f32 to vector<8x1xf32>
      %56 = arith.mulf %55, %49 : vector<8x1xf32>
      %57 = arith.addf %54, %56 : vector<8x1xf32>
      %58 = vector.extract_strided_slice %31 {offsets = [0, 16], sizes = [8, 8], strides = [1, 1]} : vector<8x128xf32> to vector<8x8xf32>
      %59 = vector.extract_strided_slice %31 {offsets = [0, 24], sizes = [8, 8], strides = [1, 1]} : vector<8x128xf32> to vector<8x8xf32>
      %60 = vector.extract_strided_slice %31 {offsets = [0, 32], sizes = [8, 8], strides = [1, 1]} : vector<8x128xf32> to vector<8x8xf32>
      %cst_32 = arith.constant 4.13516665 : f32
      %61 = vector.broadcast %cst_32 : f32 to vector<8x8xf32>
      %62 = arith.minimumf %60, %61 : vector<8x8xf32>
      %63 = vector.extract_strided_slice %31 {offsets = [0, 40], sizes = [8, 8], strides = [1, 1]} : vector<8x128xf32> to vector<8x8xf32>
      %cst_33 = arith.constant 4.13516665 : f32
      %64 = vector.broadcast %cst_33 : f32 to vector<8x8xf32>
      %65 = arith.minimumf %63, %64 : vector<8x8xf32>
      %66 = vector.broadcast %46 : vector<8x1xf32> to vector<8x8xf32>
      %67 = arith.mulf %58, %66 : vector<8x8xf32>
      %68 = vector.broadcast %53 : vector<8x1xf32> to vector<8x8xf32>
      %69 = arith.addf %67, %68 : vector<8x8xf32>
      %70 = vector.broadcast %49 : vector<8x1xf32> to vector<8x8xf32>
      %71 = arith.mulf %59, %70 : vector<8x8xf32>
      %72 = vector.broadcast %57 : vector<8x1xf32> to vector<8x8xf32>
      %73 = arith.addf %71, %72 : vector<8x8xf32>
      %74 = math.exp %62 : vector<8x8xf32>
      %75 = vector.broadcast %46 : vector<8x1xf32> to vector<8x8xf32>
      %76 = arith.mulf %74, %75 : vector<8x8xf32>
      %77 = math.exp %65 : vector<8x8xf32>
      %78 = vector.broadcast %49 : vector<8x1xf32> to vector<8x8xf32>
      %79 = arith.mulf %77, %78 : vector<8x8xf32>
      %cst_34 = arith.constant 5.000000e-01 : f32
      %80 = vector.broadcast %cst_34 : f32 to vector<8x8xf32>
      %81 = arith.mulf %80, %76 : vector<8x8xf32>
      %82 = arith.subf %69, %81 : vector<8x8xf32>
      %cst_35 = arith.constant 5.000000e-01 : f32
      %83 = vector.broadcast %cst_35 : f32 to vector<8x8xf32>
      %84 = arith.mulf %83, %79 : vector<8x8xf32>
      %85 = arith.subf %73, %84 : vector<8x8xf32>
      %cst_36 = arith.constant 5.000000e-01 : f32
      %86 = vector.broadcast %cst_36 : f32 to vector<8x8xf32>
      %87 = arith.mulf %86, %76 : vector<8x8xf32>
      %88 = arith.addf %69, %87 : vector<8x8xf32>
      %cst_37 = arith.constant 5.000000e-01 : f32
      %89 = vector.broadcast %cst_37 : f32 to vector<8x8xf32>
      %90 = arith.mulf %89, %79 : vector<8x8xf32>
      %91 = arith.addf %73, %90 : vector<8x8xf32>
      %cst_38 = arith.constant 0.000000e+00 : f32
      %92 = vector.broadcast %cst_38 : f32 to vector<8x80xf32>
      %93 = tpu.concatenate %32, %42, %82, %85, %88, %91, %92 in 1 : vector<8x8xf32>, vector<8x8xf32>, vector<8x8xf32>, vector<8x8xf32>, vector<8x8xf32>, vector<8x8xf32>, vector<8x80xf32> -> vector<8x128xf32>
      %c0_39 = arith.constant 0 : index
      %c0_40 = arith.constant 0 : index
      %94 = vector.load %arg10[%c0_39, %c0_40] : memref<8x128xf32, #tpu.memory_space<vmem>>, vector<8x128xf32>
      tpu.vector_store %arg10[%c0_39, %c0_40], %93 {strides = array<i32>} : memref<8x128xf32, #tpu.memory_space<vmem>>, vector<8x128xf32>,
    } else {
    }
    return
  }
  func.func @transform_0(%arg0: i32, %arg1: i32) -> (i32, i32) {
    %c0_i32 = arith.constant 0 : i32
    return %arg0, %arg1 : i32, i32
  }
  func.func @transform_1(%arg0: i32, %arg1: i32) -> (i32, i32) {
    %c0_i32 = arith.constant 0 : i32
    %c0_i32_0 = arith.constant 0 : i32
    return %arg0, %c0_i32 : i32, i32
  }
  func.func @transform_2(%arg0: i32, %arg1: i32) -> (i32, i32) {
    %c0_i32 = arith.constant 0 : i32
    %c0_i32_0 = arith.constant 0 : i32
    %c0_i32_1 = arith.constant 0 : i32
    return %c0_i32, %c0_i32_0 : i32, i32
  }
  func.func @transform_3(%arg0: i32, %arg1: i32) -> (i32, i32) {
    %c0_i32 = arith.constant 0 : i32
    %c0_i32_0 = arith.constant 0 : i32
    %c0_i32_1 = arith.constant 0 : i32
    return %c0_i32, %c0_i32_0 : i32, i32
  }
  func.func @transform_4(%arg0: i32, %arg1: i32) -> (i32, i32) {
    %c0_i32 = arith.constant 0 : i32
    %c0_i32_0 = arith.constant 0 : i32
    %c0_i32_1 = arith.constant 0 : i32
    return %c0_i32, %c0_i32_0 : i32, i32
  }
  func.func @transform_5(%arg0: i32, %arg1: i32) -> (i32, i32) {
    %c0_i32 = arith.constant 0 : i32
    %c0_i32_0 = arith.constant 0 : i32
    %c0_i32_1 = arith.constant 0 : i32
    return %c0_i32, %c0_i32_0 : i32, i32
  }
  func.func @transform_6(%arg0: i32, %arg1: i32) -> (i32, i32) {
    %c0_i32 = arith.constant 0 : i32
    %c0_i32_0 = arith.constant 0 : i32
    %c0_i32_1 = arith.constant 0 : i32
    return %c0_i32, %c0_i32_0 : i32, i32
  }
  func.func @transform_7(%arg0: i32, %arg1: i32) -> (i32, i32) {
    %c0_i32 = arith.constant 0 : i32
    %c0_i32_0 = arith.constant 0 : i32
    %c0_i32_1 = arith.constant 0 : i32
    return %c0_i32, %c0_i32_0 : i32, i32
  }
  func.func @transform_8(%arg0: i32, %arg1: i32) -> (i32, i32) {
    %c0_i32 = arith.constant 0 : i32
    %c0_i32_0 = arith.constant 0 : i32
    return %arg0, %c0_i32 : i32, i32
  }
}

</mosaic_0001>

<bundles_post_ra>
// kernel: tpu_custom_call.1
= control target key start
LH: loop header
LB: loop body
LE: loop exit
PB: predicated region body
PF: predicated region fallthrough
CT: control target
= control target key end

     0   :  { %s2436_s0 = inlined_call_operand.hbm [shape: s32[16], index: 0, kind: input, shape index: {}]   ;;  %s2437_s1 = inlined_call_operand.hbm [shape: f32[2,8,16,16], index: 1, kind: input, shape index: {}]   ;;  %s2438_s2 = inlined_call_operand.hbm [shape: f32[16,4,16], index: 2, kind: input, shape index: {}]   ;;  %s2439_s3 = inlined_call_operand.hbm [shape: f32[16,4,16], index: 3, kind: input, shape index: {}]   ;;  %s2440_s4 = inlined_call_operand.vmem [shape: bf16[16,8,4,4], index: 4, kind: output, shape index: {}]  }
   0x1   :  { %2446 = sst [smem:[#allocation15_spill]] %s2438_s2  ;;  %s1854_s17 = scalar_lea.hbm %s2436_s0, 16 }
   0x2   :  { %p1855_p0 = scmp.ne.s32.totalorder %s2436_s0, %s1854_s17  ;;  %p1858_p1 = scmp.lt.u32.totalorder %s1854_s17, %s2436_s0 }
   0x4   :  { %p1860_p2 = pnand %p1858_p1, %p1855_p0 }
   0x6   :  { %1863 = shalt.err (!%p1860_p2)  }
   0x7   :  { %s2020_s22 = smov [#allocation3]  }
   0x8   :  { %10 = dma.hbm_to_smem %s2436_s0, 16, %s2020_s22, [#allocation2] }
   0x9   :  { %1982 = dma.done.wait [#allocation2], 16 }
   0xa   :  { %1983 = vsyncadd [#allocation2], 4294967280 }
   0xb   :  { %12 = sfence }
   0xc   :  { %13 = vsyncpa [#allocation5], 0 }
   0xd   :  { %15 = vsyncpa [#allocation5 + $0x1], 0 }
   0xe   :  { %16 = vsyncpa [#allocation7], 0 }
   0xf   :  { %18 = vsyncpa [#allocation7 + $0x1], 0  ;;  %s2066_s25 = smov 0   ;;  %s2068_s26 = smov 0  }
  0x10   :  { %s2070_s27 = smov 0   ;;  %s2072_s28 = smov 0  }
  0x11   :  { %s2074_s29 = smov 0   ;;  %s2076_s30 = smov 0  }
  0x12   :  { %s2078_s0 = smov 0  }
  0x13 LB: > { %s2098_s5 = sadd.s32 4294967295, %s2018_s0   ;;  %s2101_s6 = sadd.s32 1, %s2018_s0   ;;  %s2018_s0 = sphi %s2078_s0, %s2471_s0   ;;  %s2014_s30 = sphi %s2076_s30, %s2470_s30   ;;  %s2010_s29 = sphi %s2074_s29, %s2469_s29   ;;  %s2006_s28 = sphi %s2072_s28, %s2468_s28   ;;  %s2002_s27 = sphi %s2070_s27, %s2467_s27   ;;  %s1998_s26 = sphi %s2068_s26, %s2466_s26   ;;  %s1994_s25 = sphi %s2066_s25, %s2465_s25  }
  0x14   : > { %s28_s7 = sld [smem:[#allocation3 + %s2018_s0]]  ;;  %s33_s9 = sadd.s32 1, %s2014_s30 }
  0x15   : > { %s29_s8 = sld [smem:[#allocation3 + %s2101_s6]]  ;;  %p40_p3 = scmp.ne.s32.totalorder %s2014_s30, %s2010_s29 }
  0x16   : > { %p46_p4 = scmp.ne.s32.totalorder %s2010_s29, %s2006_s28  ;;  %p47_p5 = scmp.eq.s32.totalorder %s2098_s5, 0 }
  0x17   : > { %s56_s10 = ssub.s32 %s2018_s0, %s2101_s6  ;;  %p41_p6 = scmp.eq.s32.totalorder %s2018_s0, 0 }
  0x18   : > { %p57_p7 = scmp.eq.s32.totalorder %s56_s10, 0  ;;  %p2115_p8 = por %p47_p5, %p46_p4 }
  0x19   : > { %s59_s12 = sadd.s32 1, %s2002_s27  ;;  %p66_p9 = scmp.ne.s32.totalorder %s2002_s27, %s1998_s26 }
  0x1a   : > { %s2447_s11 = scalar_select %p2115_p8, 1, 0 }
  0x1b   : > { %s30_s13 = ssub.s32 %s28_s7, %s29_s8  ;;  %p72_p11 = scmp.ne.s32.totalorder %s1998_s26, %s1994_s25 }
  0x1c   : > { %p31_p10 = scmp.eq.s32.totalorder %s30_s13, 0  ;;  %p68_p12 = por %p66_p9, %p41_p6 }
  0x1d   : > { %s2124_s14 = scalar_select %p57_p7, %s2002_s27, %s59_s12  }
  0x1e   : > { %s2127_s15 = scalar_select %p31_p10, %s2014_s30, %s33_s9  }
  0x1f   : > { %p2133_p13 = por %p72_p11, %p47_p5  ;;  %p2441_p0 = scmp.lt.s32.totalorder %s2018_s0, 16 }
  0x20   : > { %2448 = sst [smem:[#allocation14_spill]] %s2127_s15  ;;  %s170_s17 = sand.u32 1, %s2018_s0  }
  0x21   : > { %s2449_s16 = scalar_select %p2133_p13, 1, 0 }
  0x22   : > { %s172_s18 = sand.u32 1, %s2002_s27   ;;  %s1574_s20 = sshll.u32 %s2018_s0, 6 }
  0x23   : > { %s2140_s19 = sshll.u32 %s172_s18, 2  ;;  %s2450_s2 = sld [smem:[#allocation15_spill]] }
  0x24   : > { %s174_s24 = scalar_lea.vmem [#allocation6], %s2140_s19  ;;  %p2155_p1 = pnand %p2441_p0, %p68_p12 }
  0x25   : > { %s181_s25 = sshll.u32 %s174_s24, 4  ;;  %p2164_p2 = por %p41_p6, %p40_p3  ;;  %s2151_s25 = int_to_ptr.vmem [resolvable:$true] %s181_s25 }
  0x26   : > { %s2169_s8 = scalar_lea.sflag [#allocation7], %s170_s17  ;;  %p1866_p7 = pneg %p2155_p1 }
  0x29   : > { %s2148_s23 = scalar_lea.hbm %s2450_s2, %s1574_s20  ;;  %s1869_s13 = scalar_lea.hbm %s2450_s2, 1024 }
  0x2a   : > { %s1864_s9 = scalar_lea.hbm %s2148_s23, 64  ;;  %p1870_p3 = scmp.lt.u32.totalorder %s2148_s23, %s2450_s2 }
  0x2b   : > { %p1865_p5 = scmp.ne.s32.totalorder %s2148_s23, %s1864_s9  ;;  %p1871_p6 = scmp.lt.u32.totalorder %s1869_s13, %s1864_s9 }
  0x2c   : > { %p1873_p12 = scmp.lt.u32.totalorder %s1864_s9, %s2148_s23 }
  0x2d   : > { %p1867_p9 = pnand %p1866_p7, %p1865_p5  ;;  %p1872_p11 = por %p1871_p6, %p1870_p3 }
  0x2f   : > { %p1868_p10 = pneg %p1867_p9  ;;  %p1874_p0 = por %p1873_p12, %p1872_p11 }
  0x31   : > { %p1875_p4 = pnand %p1874_p0, %p1868_p10 }
  0x33   : > { %1878 = shalt.err (!%p1875_p4)
}
  0x34   : > { %s1879_s17 = scalar_lea.vmem %s2151_s25, 64  ;;  %s2021_s22 = smov [#allocation6]  }
  0x35   : > { %p1880_p5 = scmp.ne.s32.totalorder %s2151_s25, %s1879_s17  ;;  %s1884_s24 = sshll.u32 %s2021_s22, 4  ;;  %s1885_s24 = int_to_ptr.vmem [resolvable:$false] %s1884_s24 }
  0x36   : > { %s1886_s10 = scalar_lea.vmem %s1885_s24, 128  ;;  %p1887_p8 = scmp.lt.s32.totalorder %s2151_s25, %s1885_s24 }
  0x37   : > { %p1882_p9 = pnand %p1880_p5, %p1866_p7  ;;  %p1888_p3 = scmp.lt.s32.totalorder %s1886_s10, %s1879_s17 }
  0x39   : > { %p1883_p13 = pneg %p1882_p9  ;;  %p1889_p6 = por %p1888_p3, %p1887_p8 }
  0x3b   : > { %p1890_p11 = pnand %p1889_p6, %p1883_p13 }
  0x3d   : > { %1893 = shalt.err (!%p1890_p11)
}
  0x3e   : > { %1787 = dma.hbm_to_vmem [thread:$0]  (!%p2155_p1), %s2148_s23, 64, %s2151_s25, %s2169_s8  }
  0x3f   : > { %p204_p8 = scmp.lt.s32.totalorder %s2018_s0, 17  ;;  %s2444_s9 = sand.u32 1, %s2014_s30  }
  0x40   : > { %s1570_s12 = sshll.u32 %s2444_s9, 7  ;;  %p2453_p13 = scmp.ge.s32.totalorder %s2018_s0, 1 }
  0x41   : > { %s1771_s18 = scalar_select %p2164_p2, [#allocation3], [#allocation9] }
  0x42   : > { %p2203_p0 = pnand %p2453_p13, %p204_p8  ;;  %p2455_p4 = scmp.lt.s32.totalorder %s2018_s0, 16 }
  0x43   : > { %s1772_s21 = scalar_select %p2164_p2, %s2018_s0, 0 }
  0x44   : > { %s2454_s13 = scalar_select %p2203_p0, 1, 0 }
  0x45   : > { %s2473_s18 = smov (!%p2455_p4, %s1771_s18), [#allocation10]  ;;  %p2456_p10 = pmov %p2455_p4 }
  0x46   : > { %p2457_p12 = pmov %p2455_p4  ;;  %s152_s17 = scalar_lea.vmem [#allocation4], %s1570_s12 }
  0x47   : > { %s2475_s21 = smov (!%p2456_p10, %s1772_s21), 0  ;;  %s160_s22 = sshll.u32 %s152_s17, 4  ;;  %s2234_s22 = int_to_ptr.vmem [resolvable:$true] %s160_s22 }
  0x48   : > { %p2220_p5 = pnand %p2457_p12, %p2164_p2  ;;  %s2224_s25 = sld [smem:[%s2473_s18 + %s2475_s21]] }
  0x49   : > { %s2231_s9 = scalar_lea.hbm %s2439_s3, %s1574_s20  ;;  %s192_s7 = scalar_lea.vmem [#allocation8], %s2140_s19 }
  0x4a   : > { %s2458_s23 = scalar_select %p2220_p5, 1, 0 }
  0x4b   : > { %s199_s2 = sshll.u32 %s192_s7, 4  ;;  %s1894_s15 = scalar_lea.hbm %s2231_s9, 64  ;;  %s200_s2 = int_to_ptr.vmem [resolvable:$true] %s199_s2 }
  0x4c   : > { %p1895_p2 = scmp.ne.s32.totalorder %s2231_s9, %s1894_s15  ;;  %s1899_s20 = scalar_lea.hbm %s2439_s3, 1024 }
  0x4d   : > { %p1900_p6 = scmp.lt.u32.totalorder %s2231_s9, %s2439_s3  ;;  %p1901_p11 = scmp.lt.u32.totalorder %s1899_s20, %s1894_s15 }
  0x4e   : > { %p1897_p9 = pnand %p1895_p2, %p1866_p7  ;;  %p1903_p13 = scmp.lt.u32.totalorder %s1894_s15, %s2231_s9 }
  0x4f   : > { %p1902_p8 = por %p1901_p11, %p1900_p6 }
  0x50   : > { %p1898_p3 = pneg %p1897_p9 }
  0x51   : > { %p1904_p4 = por %p1903_p13, %p1902_p8 }
  0x53   : > { %p1905_p10 = pnand %p1904_p4, %p1898_p3 }
  0x55   : > { %1908 = shalt.err (!%p1905_p10)
}
  0x56   : > { %s1909_s19 = scalar_lea.vmem %s200_s2, 64  ;;  %s2022_s17 = smov [#allocation8]  }
  0x57   : > { %p1910_p12 = scmp.ne.s32.totalorder %s200_s2, %s1909_s19  ;;  %s1914_s24 = sshll.u32 %s2022_s17, 4  ;;  %s1915_s24 = int_to_ptr.vmem [resolvable:$false] %s1914_s24 }
  0x58   : > { %s1916_s10 = scalar_lea.vmem %s1915_s24, 128  ;;  %p1917_p0 = scmp.lt.s32.totalorder %s200_s2, %s1915_s24 }
  0x59   : > { %p1912_p2 = pnand %p1910_p12, %p1866_p7  ;;  %p1918_p5 = scmp.lt.s32.totalorder %s1916_s10, %s1909_s19 }
  0x5b   : > { %p1913_p9 = pneg %p1912_p2  ;;  %p1919_p6 = por %p1918_p5, %p1917_p0 }
  0x5d   : > { %p1920_p11 = pnand %p1919_p6, %p1913_p9 }
  0x5f   : > { %1923 = shalt.err (!%p1920_p11)
}
  0x60   : > { %1790 = dma.hbm_to_vmem [thread:$0]  (!%p2155_p1), %s2231_s9, 64, %s200_s2, %s2169_s8  }
  0x61   : > { %s1609_s15 = sshll.u32 %s2224_s25, 11  ;;  %s2459_s20 = sand.u32 1, %s2014_s30  }
  0x62   : > { %s2260_s12 = scalar_lea.hbm %s2437_s1, %s1609_s15  ;;  %s2264_s18 = scalar_lea.sflag [#allocation5], %s2459_s20 }
  0x63   : > { %s1924_s28 = scalar_lea.hbm %s2260_s12, 2048  ;;  %p2460_p0 = scmp.ne.s32.totalorder %s2458_s23, 0 }
  0x64   : > { %p1925_p7 = scmp.ne.s32.totalorder %s2260_s12, %s1924_s28  ;;  %s1929_s9 = scalar_lea.hbm %s2437_s1, 4096 }
  0x65   : > { %p1926_p5 = pneg %p2460_p0  ;;  %p1930_p8 = scmp.lt.u32.totalorder %s2260_s12, %s2437_s1 }
  0x66   : > { %p1931_p13 = scmp.lt.u32.totalorder %s1929_s9, %s1924_s28  ;;  %p1933_p10 = scmp.lt.u32.totalorder %s1924_s28, %s2260_s12 }
  0x67   : > { %p1927_p1 = pnand %p1926_p5, %p1925_p7 }
  0x68   : > { %p1932_p4 = por %p1931_p13, %p1930_p8 }
  0x69   : > { %p1928_p3 = pneg %p1927_p1 }
  0x6a   : > { %p1934_p12 = por %p1933_p10, %p1932_p4 }
  0x6c   : > { %p1935_p2 = pnand %p1934_p12, %p1928_p3 }
  0x6e   : > { %1938 = shalt.err (!%p1935_p2)
}
  0x6f   : > { %s1939_s19 = scalar_lea.vmem %s2234_s22, 2048  ;;  %s2023_s17 = smov [#allocation4]  }
  0x70   : > { %p1940_p9 = scmp.ne.s32.totalorder %s2234_s22, %s1939_s19  ;;  %s1944_s24 = sshll.u32 %s2023_s17, 4  ;;  %s1945_s24 = int_to_ptr.vmem [resolvable:$false] %s1944_s24 }
  0x71   : > { %s1946_s10 = scalar_lea.vmem %s1945_s24, 4096  ;;  %p1947_p7 = scmp.lt.s32.totalorder %s2234_s22, %s1945_s24 }
  0x72   : > { %p1942_p6 = pnand %p1940_p9, %p1926_p5  ;;  %p1948_p1 = scmp.lt.s32.totalorder %s1946_s10, %s1939_s19 }
  0x74   : > { %p1943_p11 = pneg %p1942_p6  ;;  %p1949_p8 = por %p1948_p1, %p1947_p7 }
  0x76   : > { %p1950_p13 = pnand %p1949_p8, %p1943_p11 }
  0x78   : > { %1953 = shalt.err (!%p1950_p13)
}
  0x79   : > { %s2024_s15 = smov 128   ;;  %s2025_s7 = smov 8  }
  0x7a   : > { %1784 = dma.hbm_to_vmem [thread:$0]  (!%p2460_p0), %s2260_s12, 2048, %s2234_s22, %s2264_s18, %s2024_s15, %s2024_s15, %s2025_s7  }
  0x7b   : > { %p2461_p5 = scmp.ne.s32.totalorder %s2454_s13, 0 }
  0x7c   : > { %s210_s0 = sand.u32 (!%p2461_p5), 1, %s2010_s29   ;;  %p2462_p3 = scmp.ne.s32.totalorder (!%p2461_p5), %s2447_s11, 0 }
  0x7d   : > { %208 = sbr.rel (%p2461_p5) target bundleno = 584 (0x248), region = 32  ;;  %s1578_s20 = sshll.u32 (!%p2461_p5), %s210_s0, 7 }
  0x7e   : > { %s211_s28 = scalar_lea.sflag (!%p2461_p5), [#allocation5], %s210_s0  ;;  %s2295_s2 = scalar_lea.vmem (!%p2461_p5), [#allocation4], %s1578_s20 }
  0x84   : > { %1985 = dma.done.wait (%p2462_p3), %s211_s28, 2048  }
  0x85   : > { %1987 = vsyncadd (%p2462_p3), %s211_s28, 4294965248  ;;  %s219_s23 = sand.u32 1, %s2098_s5   ;;  %s221_s22 = sand.u32 1, %s1998_s26  }
  0x86   : > { %s2303_s12 = sshll.u32 %s221_s22, 2  ;;  %s220_s13 = scalar_lea.sflag [#allocation7], %s219_s23 }
  0x87   : > { %s223_s18 = scalar_lea.vmem [#allocation6], %s2303_s12  ;;  %p2463_p0 = scmp.ne.s32.totalorder %s2449_s16, 0 }
  0x89   : > { %1989 = dma.done.wait (%p2463_p0), %s220_s13, 128  }
  0x8a   : > { %1991 = vsyncadd (%p2463_p0), %s220_s13, 4294967168  ;;  %v2026_v0 = vmov 0.0|0.0   ;;  %vm2027_vm0 = vmmov 0   ;;  %v2028_v1 = vmov 0.0   ;;  %v271_v2 = vld [vmem:[%s2295_s2] sm:$0xff]  ;;  %v272_v3 = vld [vmem:[%s2295_s2 + $0x8] sm:$0xff] }
  0x8b   : > { %1747 = vmatprep.subr.bf16.mxu0 %v2026_v0  ;;  %1750 = vmatprep.subr.bf16.mxu1 %v2026_v0  ;;  %v273_v4 = vld [vmem:[%s2295_s2 + $0x10] sm:$0xff]  ;;  %v1748_v5 = vpack.c.bf16 %v272_v3, %v271_v2  ;;  %v274_v6 = vld [vmem:[%s2295_s2 + $0x18] sm:$0xff]  ;;  %v275_v7 = vld [vmem:[%s2295_s2 + $0x20] sm:$0xff]  ;;  %vm289_vm1 = vcmask 130048   ;;  %s232_s11 = scalar_lea.vmem [#allocation8], %s2303_s12  ;;  %p266_p4 = scmp.lt.s32.totalorder %s2098_s5, 15 }
  0x8c   : > { %1655 = vmatprep.mubr.msk.f32.mxu0 %vm2027_vm0, %v2028_v1  ;;  %1662 = vmatprep.mubr.msk.f32.mxu1 %vm2027_vm0, %v2028_v1  ;;  %v1751_v8 = vpack.c.bf16 %v274_v6, %v273_v4  ;;  %v276_v9 = vld [vmem:[%s2295_s2 + $0x28] sm:$0xff]  ;;  %v277_v10 = vld [vmem:[%s2295_s2 + $0x30] sm:$0xff]  ;;  %v278_v11 = vld [vmem:[%s2295_s2 + $0x38] sm:$0xff]  ;;  %vm1448_vm2 = vcmask 25600  }
  0x8d   : > { %1749 = vmatpush3.bf16.msra.mxu0 %v1748_v5  ;;  %v287_v12 = vld [vmem:[%s223_s18] sm:$0xf]  ;;  %v1754_v13 = vpack.c.bf16 %v276_v9, %v275_v7  ;;  %v1757_v14 = vpack.c.bf16 %v278_v11, %v277_v10  ;;  %v280_v16 = vld [vmem:[%s2295_s2 + $0x48] sm:$0xff]  ;;  %v281_v17 = vld [vmem:[%s2295_s2 + $0x50] sm:$0xff]  ;;  %s2477_s5 = smov (!%p266_p4, %s2098_s5), 15 }
  0x8e   : > { %1752 = vmatpush3.bf16.msra.mxu1 %v1751_v8  ;;  %1753 = vmatprep.subr.bf16.mxu0 %v2026_v0  ;;  %v279_v15 = vld [vmem:[%s2295_s2 + $0x40] sm:$0xff]  ;;  %v282_v18 = vld [vmem:[%s2295_s2 + $0x58] sm:$0xff]  ;;  %v284_v22 = vld [vmem:[%s2295_s2 + $0x68] sm:$0xff]  ;;  %s1610_s16 = sshll.u32 %s2477_s5, 4 }
  0x8f   : > { %1756 = vmatprep.subr.bf16.mxu1 %v2026_v0  ;;  %v1760_v19 = vpack.c.bf16 %v280_v16, %v279_v15  ;;  %v1763_v20 = vpack.c.bf16 %v282_v18, %v281_v17  ;;  %v283_v21 = vld [vmem:[%s2295_s2 + $0x60] sm:$0xff]  ;;  %v285_v23 = vld [vmem:[%s2295_s2 + $0x70] sm:$0xff]  ;;  %v286_v24 = vld [vmem:[%s2295_s2 + $0x78] sm:$0xff]  ;;  %s2396_s25 = scalar_lea.vmem %s2440_s4, %s1610_s16 }
  0x90   : > { %1656 = vmatmul.mubr.msk.f32.vlgmr.msra.gmra.mrb[0].mxu0 %vm289_vm1, %v287_v12  ;;  %v1766_v25 = vpack.c.bf16 %v284_v22, %v283_v21  ;;  %v1769_v26 = vpack.c.bf16 %v286_v24, %v285_v23  ;;  %v288_v27 = vld [vmem:[%s232_s11] sm:$0xf] }
  0x91   : > { %1663 = vmatmul.mubr.msk.f32.vlgmr.msra.gmra.mrb[0].mxu1 %vm289_vm1, %v287_v12  ;;  %1755 = vmatpush3.bf16.msra.mxu0 %v1754_v13 }
  0x92   : > { %1758 = vmatpush3.bf16.msra.mxu1 %v1757_v14  ;;  %1669 = vmatprep.mubr.msk.f32.mxu0 %vm2027_vm0, %v2028_v1 }
  0x93   : > { %1676 = vmatprep.mubr.msk.f32.mxu1 %vm2027_vm0, %v2028_v1  ;;  %1759 = vmatprep.subr.bf16.mxu0 %v2026_v0 }
  0x94   : > { %1670 = vmatmul.mubr.msk.f32.vlgmr.msra.gmra.mrb[2].mxu0 %vm289_vm1, %v287_v12  ;;  %1762 = vmatprep.subr.bf16.mxu1 %v2026_v0 }
  0x95   : > { %1677 = vmatmul.mubr.msk.f32.vlgmr.msra.gmra.mrb[2].mxu1 %vm289_vm1, %v287_v12  ;;  %1761 = vmatpush3.bf16.msra.mxu0 %v1760_v19 }
  0x96   : > { %1764 = vmatpush3.bf16.msra.mxu1 %v1763_v20  ;;  %1683 = vmatprep.mubr.msk.f32.mxu0 %vm2027_vm0, %v2028_v1 }
  0x97   : > { %1690 = vmatprep.mubr.msk.f32.mxu1 %vm2027_vm0, %v2028_v1  ;;  %1765 = vmatprep.subr.bf16.mxu0 %v2026_v0 }
  0x98   : > { %1684 = vmatmul.mubr.msk.f32.vlgmr.msra.gmra.mrb[4].mxu0 %vm289_vm1, %v287_v12  ;;  %1768 = vmatprep.subr.bf16.mxu1 %v2026_v0 }
  0x99   : > { %1691 = vmatmul.mubr.msk.f32.vlgmr.msra.gmra.mrb[4].mxu1 %vm289_vm1, %v287_v12  ;;  %1767 = vmatpush3.bf16.msra.mxu0 %v1766_v25 }
  0x9a   : > { %1770 = vmatpush3.bf16.msra.mxu1 %v1769_v26  ;;  %1697 = vmatprep.mubr.msk.f32.mxu0 %vm2027_vm0, %v2028_v1 }
  0x9b   : > { %1704 = vmatprep.mubr.msk.f32.mxu1 %vm2027_vm0, %v2028_v1  ;;  %1707 = vmatprep.subr.mxu0 %v2028_v1 }
  0x9c   : > { %1698 = vmatmul.mubr.msk.f32.vlgmr.msra.gmra.mrb[6].mxu0 %vm289_vm1, %v287_v12  ;;  %1712 = vmatprep.subr.mxu1 %v2028_v1 }
  0x9d   : > { %1705 = vmatmul.mubr.msk.f32.vlgmr.msra.gmra.mrb[6].mxu1 %vm289_vm1, %v287_v12  ;;  %1709 = vmatprep.mubr.msk.f32.mxu0 %vm2027_vm0, %v2028_v1 }
  0x9e   : > { %1714 = vmatprep.mubr.msk.f32.mxu1 %vm2027_vm0, %v2028_v1 }
  0xa2   : > { %1708 = vmatpush3.xpose.msk.msra.mxu0 %vm289_vm1, %v288_v27 }
  0xa3   : > { %1713 = vmatpush3.xpose.msk.msra.mxu1 %vm289_vm1, %v288_v27  ;;  %1717 = vmatprep.subr.mxu0 %v2028_v1 }
  0xa4   : > { %1722 = vmatprep.subr.mxu1 %v2028_v1 }
 0x163   : > { %v359_v28 = vpop.f32.mrb[0].mxu0 }
 0x164   : > { %v429_v29 = vpop.f32.mrb[0].mxu1  ;;  %v1657_v30 = vpop.f32.mrb[1].mxu0  ;;  %1710 = vmatmul.mubr.msk.f32.vlgmr.msra.gmra.mrb[8].mxu0 %vm289_vm1, %v359_v28 }
 0x165   : > { %v1664_v31 = vpop.f32.mrb[1].mxu1  ;;  %1715 = vmatmul.mubr.msk.f32.vlgmr.msra.gmra.mrb[8].mxu1 %vm289_vm1, %v429_v29  ;;  %1718 = vmatpush3.xpose.msk.msra.mxu0 %vm289_vm1, %v288_v27 }
 0x166   : > { %1723 = vmatpush3.xpose.msk.msra.mxu1 %vm289_vm1, %v288_v27  ;;  %1719 = vmatprep.mubr.msk.f32.mxu0 %vm2027_vm0, %v2028_v1 }
 0x167   : > { %v499_v32 = vpop.f32.mrb[2].mxu0  ;;  %1724 = vmatprep.mubr.msk.f32.mxu1 %vm2027_vm0, %v2028_v1  ;;  %1727 = vmatprep.subr.mxu0 %v2028_v1 }
 0x168   : > { %v569_v33 = vpop.f32.mrb[2].mxu1  ;;  %v1671_v34 = vpop.f32.mrb[3].mxu0  ;;  %1720 = vmatmul.mubr.msk.f32.vlgmr.msra.gmra.mrb[10].mxu0 %vm289_vm1, %v499_v32  ;;  %1732 = vmatprep.subr.mxu1 %v2028_v1 }
 0x169   : > { %v1678_v35 = vpop.f32.mrb[3].mxu1  ;;  %1725 = vmatmul.mubr.msk.f32.vlgmr.msra.gmra.mrb[10].mxu1 %vm289_vm1, %v569_v33  ;;  %1728 = vmatpush3.xpose.msk.msra.mxu0 %vm289_vm1, %v288_v27 }
 0x16a   : > { %1733 = vmatpush3.xpose.msk.msra.mxu1 %vm289_vm1, %v288_v27  ;;  %1729 = vmatprep.mubr.msk.f32.mxu0 %vm2027_vm0, %v2028_v1 }
 0x16b   : > { %v639_v36 = vpop.f32.mrb[4].mxu0  ;;  %1734 = vmatprep.mubr.msk.f32.mxu1 %vm2027_vm0, %v2028_v1  ;;  %1737 = vmatprep.subr.mxu0 %v2028_v1 }
 0x16c   : > { %v709_v37 = vpop.f32.mrb[4].mxu1  ;;  %v1685_v38 = vpop.f32.mrb[5].mxu0  ;;  %1730 = vmatmul.mubr.msk.f32.vlgmr.msra.gmra.mrb[12].mxu0 %vm289_vm1, %v639_v36  ;;  %1742 = vmatprep.subr.mxu1 %v2028_v1 }
 0x16d   : > { %v1692_v39 = vpop.f32.mrb[5].mxu1  ;;  %1735 = vmatmul.mubr.msk.f32.vlgmr.msra.gmra.mrb[12].mxu1 %vm289_vm1, %v709_v37  ;;  %1738 = vmatpush3.xpose.msk.msra.mxu0 %vm289_vm1, %v288_v27 }
 0x16e   : > { %1743 = vmatpush3.xpose.msk.msra.mxu1 %vm289_vm1, %v288_v27  ;;  %1739 = vmatprep.mubr.msk.f32.mxu0 %vm2027_vm0, %v2028_v1 }
 0x16f   : > { %v779_v40 = vpop.f32.mrb[6].mxu0  ;;  %1744 = vmatprep.mubr.msk.f32.mxu1 %vm2027_vm0, %v2028_v1 }
 0x170   : > { %v849_v41 = vpop.f32.mrb[6].mxu1  ;;  %v1699_v42 = vpop.f32.mrb[7].mxu0  ;;  %1740 = vmatmul.mubr.msk.f32.vlgmr.msra.gmra.mrb[14].mxu0 %vm289_vm1, %v779_v40 }
 0x171   : > { %v1706_v43 = vpop.f32.mrb[7].mxu1  ;;  %1745 = vmatmul.mubr.msk.f32.vlgmr.msra.gmra.mrb[14].mxu1 %vm289_vm1, %v849_v41 }
 0x237   : > { %v925_v44 = vpop.f32.mrb[8].mxu0 }
 0x238   : > { %v1440_v45 = vpack.c.bf16 %v925_v44, %v925_v44  ;;  %v998_v46 = vpop.f32.mrb[8].mxu1  ;;  %v1711_v47 = vpop.f32.mrb[9].mxu0 }
 0x239   : > { %v1441_v48 = vpack.c.bf16 %v998_v46, %v998_v46  ;;  %v1716_v49 = vpop.f32.mrb[9].mxu1 }
 0x23a   : > { %1449 = vst.msk [vmem:[%s2396_s25] sm:$0x3] %vm1448_vm2, %v1440_v45 }
 0x23b   : > { %1450 = vst.msk [vmem:[%s2396_s25 + $0x2] sm:$0x3] %vm1448_vm2, %v1441_v48  ;;  %v1071_v50 = vpop.f32.mrb[10].mxu0 }
 0x23c   : > { %v1442_v51 = vpack.c.bf16 %v1071_v50, %v1071_v50  ;;  %v1144_v52 = vpop.f32.mrb[10].mxu1  ;;  %v1721_v53 = vpop.f32.mrb[11].mxu0 }
 0x23d   : > { %v1443_v54 = vpack.c.bf16 %v1144_v52, %v1144_v52  ;;  %v1726_v55 = vpop.f32.mrb[11].mxu1 }
 0x23e   : > { %1451 = vst.msk [vmem:[%s2396_s25 + $0x4] sm:$0x3] %vm1448_vm2, %v1442_v51 }
 0x23f   : > { %1452 = vst.msk [vmem:[%s2396_s25 + $0x6] sm:$0x3] %vm1448_vm2, %v1443_v54  ;;  %v1217_v56 = vpop.f32.mrb[12].mxu0 }
 0x240   : > { %v1444_v57 = vpack.c.bf16 %v1217_v56, %v1217_v56  ;;  %v1290_v58 = vpop.f32.mrb[12].mxu1  ;;  %v1731_v59 = vpop.f32.mrb[13].mxu0 }
 0x241   : > { %v1445_v60 = vpack.c.bf16 %v1290_v58, %v1290_v58  ;;  %v1736_v61 = vpop.f32.mrb[13].mxu1 }
 0x242   : > { %1453 = vst.msk [vmem:[%s2396_s25 + $0x8] sm:$0x3] %vm1448_vm2, %v1444_v57 }
 0x243   : > { %1454 = vst.msk [vmem:[%s2396_s25 + $0xa] sm:$0x3] %vm1448_vm2, %v1445_v60  ;;  %v1363_v62 = vpop.f32.mrb[14].mxu0 }
 0x244   : > { %v1446_v63 = vpack.c.bf16 %v1363_v62, %v1363_v62  ;;  %v1436_v0 = vpop.f32.mrb[14].mxu1  ;;  %v1741_v1 = vpop.f32.mrb[15].mxu0 }
 0x245   : > { %v1447_v2 = vpack.c.bf16 %v1436_v0, %v1436_v0  ;;  %v1746_v3 = vpop.f32.mrb[15].mxu1 }
 0x246   : > { %1455 = vst.msk [vmem:[%s2396_s25 + $0xc] sm:$0x3] %vm1448_vm2, %v1446_v63 }
 0x247   : > { %1456 = vst.msk [vmem:[%s2396_s25 + $0xe] sm:$0x3] %vm1448_vm2, %v1447_v2 }
 0x248 PF: > { %s2464_s5 = sld [smem:[#allocation14_spill]]  ;;  %p21_p10 = scmp.ge.s32.totalorder %s2101_s6, 18  }
 0x249   : > { %s2465_s25 = smov %s1998_s26  ;;  %s2466_s26 = smov %s2002_s27 }
 0x24a   : > { %s2467_s27 = smov %s2124_s14  ;;  %s2468_s28 = smov %s2010_s29 }
 0x24b   : > { %s2469_s29 = smov %s2014_s30  ;;  %s2471_s0 = smov %s2101_s6 }
 0x24c   :  { %23 = sbr.rel (!%p21_p10) target bundleno = 19 (0x13), region = 96 }
 0x24e   : > { %s2470_s30 = smov %s2464_s5 }
 0x253   :  { %1478 = vsyncpa [#allocation5], 1 }
 0x254   :  { %1480 = vsyncpa [#allocation5 + $0x1], 1 }
 0x255   :  { %1481 = vsyncpa [#allocation7], 1 }
 0x256   :  { %1483 = vsyncpa [#allocation7 + $0x1], 1 }

// kernel: tpu_custom_call.1
= control target key start
LH: loop header
LB: loop body
LE: loop exit
PB: predicated region body
PF: predicated region fallthrough
CT: control target
= control target key end

     0   :  { %6 = vsyncpa [#allocation3], 0  ;;  %s125_s0 = inlined_call_operand.hbm [shape: f32[8,128], index: 0, kind: input, shape index: {}]   ;;  %s126_s1 = inlined_call_operand.hbm [shape: f32[8,128], index: 1, kind: output, shape index: {}]  }
   0x1   :  { %7 = vsyncpa [#allocation4], 0  ;;  %s89_s6 = smov [#allocation2]   ;;  %s41_s10 = scalar_lea.hbm %s125_s0, 128 }
   0x2   :  { %s14_s7 = sshll.u32 %s89_s6, 4  ;;  %p42_p0 = scmp.ne.s32.totalorder %s125_s0, %s41_s10  ;;  %s15_s7 = int_to_ptr.vmem [resolvable:$true] %s14_s7 }
   0x3   :  { %p45_p1 = scmp.lt.u32.totalorder %s41_s10, %s125_s0 }
   0x5   :  { %p47_p2 = pnand %p45_p1, %p42_p0 }
   0x7   :  { %50 = shalt.err (!%p47_p2)
}
   0x8   :  { %s51_s15 = scalar_lea.vmem %s15_s7, 128  ;;  %p56_p4 = scmp.lt.s32.totalorder %s15_s7, %s15_s7 }
   0x9   :  { %p52_p3 = scmp.ne.s32.totalorder %s15_s7, %s51_s15  ;;  %p57_p5 = scmp.lt.s32.totalorder %s51_s15, %s51_s15 }
   0xb   :  { %p58_p6 = por %p57_p5, %p56_p4 }
   0xd   :  { %p59_p7 = pnand %p58_p6, %p52_p3 }
   0xf   :  { %62 = shalt.err (!%p59_p7)
}
  0x10   :  { %17 = dma.hbm_to_vmem [thread:$0]  %s125_s0, 128, %s15_s7, [#allocation3]  }
  0x11   :  { %85 = dma.done.wait [#allocation3], 128  }
  0x12   :  { %86 = vsyncadd [#allocation3], 4294967168  ;;  %s90_s18 = smov [#allocation5]   ;;  %v21_v0 = vld [vmem:[#allocation2] sm:$0xff] }
  0x13   :  { %s30_s19 = sshll.u32 %s90_s18, 4  ;;  %v22_v1 = vadd.f32 1.0, %v21_v0  ;;  %s31_s19 = int_to_ptr.vmem [resolvable:$true] %s30_s19 }
  0x14   :  { %s63_s20 = scalar_lea.vmem %s31_s19, 128  ;;  %p68_p9 = scmp.lt.s32.totalorder %s31_s19, %s31_s19 }
  0x15   :  { %23 = vst [vmem:[#allocation5] sm:$0xff] %v22_v1  ;;  %p64_p8 = scmp.ne.s32.totalorder %s31_s19, %s63_s20  ;;  %p69_p10 = scmp.lt.s32.totalorder %s63_s20, %s63_s20 }
  0x17   :  { %p70_p11 = por %p69_p10, %p68_p9 }
  0x19   :  { %p71_p12 = pnand %p70_p11, %p64_p8 }
  0x1b   :  { %74 = shalt.err (!%p71_p12)
}
  0x1c   :  { %s75_s23 = scalar_lea.hbm %s126_s1, 128 }
  0x1d   :  { %p76_p13 = scmp.ne.s32.totalorder %s126_s1, %s75_s23  ;;  %p79_p0 = scmp.lt.u32.totalorder %s75_s23, %s126_s1 }
  0x1f   :  { %p81_p1 = pnand %p79_p0, %p76_p13 }
  0x21   :  { %84 = shalt.err (!%p81_p1)
}
  0x22   :  { %33 = dma.vmem_to_hbm [thread:$0]  %s31_s19, 128, %s126_s1, [#allocation4]  }
  0x23   :  { %87 = dma.done.wait [#allocation4], 128  }
  0x24   :  { %88 = vsyncadd [#allocation4], 4294967168 }
  0x25   :  { %37 = vsyncpa [#allocation3], 1 }
  0x26   :  { %38 = vsyncpa [#allocation4], 1 }

// kernel: tpu_custom_call.1
= control target key start
LH: loop header
LB: loop body
LE: loop exit
PB: predicated region body
PF: predicated region fallthrough
CT: control target
= control target key end

     0   :  { %s1958_s0 = inlined_call_operand.vmem [shape: bf16[16,128], index: 0, kind: input, shape index: {}]   ;;  %s1959_s1 = inlined_call_operand.vmem [shape: f32[16,4], index: 1, kind: input, shape index: {}]   ;;  %s1960_s2 = inlined_call_operand.hbm [shape: bf16[128,256], index: 2, kind: input, shape index: {}]   ;;  %s1961_s3 = inlined_call_operand.vmem [shape: f32[1,256], index: 3, kind: input, shape index: {}]   ;;  %s1962_s4 = inlined_call_operand.hbm [shape: bf16[256,256], index: 4, kind: input, shape index: {}]   ;;  %s1963_s5 = inlined_call_operand.vmem [shape: f32[1,256], index: 5, kind: input, shape index: {}]   ;;  %s1964_s6 = inlined_call_operand.hbm [shape: bf16[256,128], index: 6, kind: input, shape index: {}]   ;;  %s1965_s7 = inlined_call_operand.vmem [shape: f32[1,128], index: 7, kind: input, shape index: {}]   ;;  %s1966_s8 = inlined_call_operand.hbm [shape: f32[16,128], index: 8, kind: output, shape index: {}]  }
   0x1   :  { %1975 = sst [smem:[#allocation18_spill]] %s1962_s4 }
   0x2   :  { %13 = vsyncpa [#allocation4], 0 }
   0x3   :  { %14 = vsyncpa [#allocation7], 0 }
   0x4   :  { %15 = vsyncpa [#allocation5], 0 }
   0x5   :  { %17 = vsyncpa [#allocation5 + $0x1], 0  ;;  %s1736_s27 = smov 0   ;;  %s1738_s28 = smov 0  }
   0x6   :  { %s1740_s29 = smov 0   ;;  %s1742_s30 = smov 0  }
   0x7   :  { %s1744_s9 = smov 0   ;;  %s1746_s10 = smov 0  }
   0x8 LB: > { %1976 = sst [smem:[#allocation13_spill]] %s1660_s29  ;;  %s1199_s11 = sadd.s32 4294967295, %s1672_s10   ;;  %s1672_s10 = sphi %s1746_s10, %s23_s10   ;;  %s1668_s9 = sphi %s1744_s9, %s1996_s9   ;;  %s1664_s30 = sphi %s1742_s30, %s1995_s30   ;;  %s1660_s29 = sphi %s1740_s29, %s1994_s29   ;;  %s1656_s28 = sphi %s1738_s28, %s1998_s28   ;;  %s1652_s27 = sphi %s1736_s27, %s1997_s27  }
   0x9   : > { %1977 = sst [smem:[#allocation14_spill]] %s1668_s9  ;;  %s1200_s12 = sadd.s32 4294967294, %s1672_s10  }
   0xa   : > { %s35_s13 = sadd.s32 1, %s1668_s9  ;;  %s222_s14 = sadd.s32 1, %s1660_s29 }
   0xb   : > { %p37_p0 = scmp.ge.s32.totalorder %s35_s13, 2  ;;  %p232_p1 = scmp.ne.s32.totalorder %s1660_s29, %s1656_s28 }
   0xc   : > { %p233_p2 = scmp.eq.s32.totalorder %s1199_s11, 1  ;;  %p238_p3 = scmp.ne.s32.totalorder %s1656_s28, %s1652_s27 }
   0xd   : > { %s2000_s13 = smov (%p37_p0, %s35_s13), 0  ;;  %p239_p5 = scmp.eq.s32.totalorder %s1200_s12, 1 }
   0xe   : > { %1978 = sst [smem:[#allocation15_spill]] %s2000_s13  ;;  %p1776_p4 = por %p233_p2, %p232_p1 }
   0xf   : > { %s219_s16 = ssub.s32 %s1668_s9, %s2000_s13  ;;  %p1201_p6 = scmp.ge.s32.totalorder %s1672_s10, 1 }
  0x10   : > { %s1979_s15 = scalar_select %p1776_p4, 1, 0 }
  0x11   : > { %p220_p7 = scmp.eq.s32.totalorder %s219_s16, 0  ;;  %p1783_p8 = por %p239_p5, %p238_p3 }
  0x12   : > { %p246_p9 = scmp.lt.s32.totalorder %s1672_s10, 3  ;;  %p1795_p11 = scmp.eq.s32.totalorder %s1199_s11, 0 }
  0x13   : > { %s1980_s17 = scalar_select %p1783_p8, 1, 0 }
  0x14   : > { %s1789_s18 = scalar_select %p220_p7, %s1660_s29, %s222_s14  }
  0x15   : > { %1981 = sst [smem:[#allocation16_spill]] %s1980_s17  ;;  %p1791_p10 = pnand %p1201_p6, %p246_p9 }
  0x16   : > { %1982 = sst [smem:[#allocation17_spill]] %s1789_s18  ;;  %s1674_s21 = smov [#allocation6]  }
  0x17   : > { %s1983_s19 = scalar_select %p1791_p10, 1, 0 }
  0x18   : > { %s1984_s20 = scalar_select %p1795_p11, 1, 0 }
  0x19   : > { %p1318_p12 = pneg %p1791_p10  ;;  %s274_s22 = sshll.u32 %s1674_s21, 4  ;;  %s275_s22 = int_to_ptr.vmem [resolvable:$true] %s274_s22 }
  0x1a   : > { %s1675_s24 = smov [#allocation3]   ;;  %s1986_s4 = sld [smem:[#allocation18_spill]] }
  0x1b   : > { %p1803_p13 = pnand %p1795_p11, %p1318_p12  ;;  %s258_s25 = sshll.u32 %s1675_s24, 4  ;;  %s259_s25 = int_to_ptr.vmem [resolvable:$true] %s258_s25 }
  0x1d   : > { %p1815_p1 = pneg %p1803_p13 }
  0x20   : > { %s1502_s11 = scalar_lea.hbm %s1986_s4, 4096 }
  0x21   : > { %p1503_p0 = scmp.ne.s32.totalorder %s1986_s4, %s1502_s11  ;;  %p1509_p5 = scmp.lt.u32.totalorder %s1502_s11, %s1986_s4 }
  0x23   : > { %p1505_p2 = pnand %p1815_p1, %p1503_p0 }
  0x25   : > { %p1506_p3 = pneg %p1505_p2 }
  0x27   : > { %p1511_p6 = pnand %p1509_p5, %p1506_p3 }
  0x29   : > { %1514 = shalt.err (!%p1511_p6)
}
  0x2a   : > { %s1515_s24 = scalar_lea.vmem %s275_s22, 4096  ;;  %p1523_p8 = scmp.lt.s32.totalorder %s275_s22, %s275_s22 }
  0x2b   : > { %p1516_p7 = scmp.ne.s32.totalorder %s275_s22, %s1515_s24  ;;  %p1524_p4 = scmp.lt.s32.totalorder %s1515_s24, %s1515_s24 }
  0x2d   : > { %p1518_p9 = pnand %p1516_p7, %p1815_p1  ;;  %p1525_p11 = por %p1524_p4, %p1523_p8 }
  0x2f   : > { %p1519_p12 = pneg %p1518_p9 }
  0x31   : > { %p1526_p10 = pnand %p1525_p11, %p1519_p12 }
  0x33   : > { %1529 = shalt.err (!%p1526_p10)
}
  0x34   : > { %s1676_s26 = smov 128   ;;  %s1677_s12 = smov 8  }
  0x35   : > { %1324 = dma.hbm_to_vmem [thread:$0]  (!%p1803_p13), %s1986_s4, 4096, %s275_s22, [#allocation7], %s1676_s26, %s1676_s26, %s1677_s12  }
  0x36   : > { %s1530_s16 = scalar_lea.hbm %s1960_s2, 2048 }
  0x37   : > { %p1531_p4 = scmp.ne.s32.totalorder %s1960_s2, %s1530_s16  ;;  %p1537_p11 = scmp.lt.u32.totalorder %s1530_s16, %s1960_s2 }
  0x39   : > { %p1533_p8 = pnand %p1531_p4, %p1815_p1 }
  0x3b   : > { %p1534_p10 = pneg %p1533_p8 }
  0x3d   : > { %p1539_p0 = pnand %p1537_p11, %p1534_p10 }
  0x3f   : > { %1542 = shalt.err (!%p1539_p0)
}
  0x40   : > { %s1543_s9 = scalar_lea.vmem %s259_s25, 2048  ;;  %p1551_p6 = scmp.lt.s32.totalorder %s259_s25, %s259_s25 }
  0x41   : > { %p1544_p2 = scmp.ne.s32.totalorder %s259_s25, %s1543_s9  ;;  %p1552_p7 = scmp.lt.s32.totalorder %s1543_s9, %s1543_s9 }
  0x43   : > { %p1546_p3 = pnand %p1544_p2, %p1815_p1  ;;  %p1553_p9 = por %p1552_p7, %p1551_p6 }
  0x45   : > { %p1547_p5 = pneg %p1546_p3 }
  0x47   : > { %p1554_p12 = pnand %p1553_p9, %p1547_p5 }
  0x49   : > { %1557 = shalt.err (!%p1554_p12)
}
  0x4a   : > { %1321 = dma.hbm_to_vmem [thread:$0]  (!%p1803_p13), %s1960_s2, 2048, %s259_s25, [#allocation4], %s1676_s26, %s1676_s26, %s1677_s12  }
  0x4b   : > { %s1678_s17 = smov [#allocation8]   ;;  %s1558_s14 = scalar_lea.hbm %s1964_s6, 2048 }
  0x4c   : > { %s290_s22 = sshll.u32 %s1678_s17, 4  ;;  %p1559_p4 = scmp.ne.s32.totalorder %s1964_s6, %s1558_s14  ;;  %s291_s22 = int_to_ptr.vmem [resolvable:$true] %s290_s22 }
  0x4d   : > { %p1565_p11 = scmp.lt.u32.totalorder %s1558_s14, %s1964_s6 }
  0x4e   : > { %p1561_p8 = pnand %p1559_p4, %p1815_p1 }
  0x50   : > { %p1562_p10 = pneg %p1561_p8 }
  0x52   : > { %p1567_p0 = pnand %p1565_p11, %p1562_p10 }
  0x54   : > { %1570 = shalt.err (!%p1567_p0)
}
  0x55   : > { %s1571_s25 = scalar_lea.vmem %s291_s22, 2048  ;;  %p1579_p6 = scmp.lt.s32.totalorder %s291_s22, %s291_s22 }
  0x56   : > { %p1572_p2 = scmp.ne.s32.totalorder %s291_s22, %s1571_s25  ;;  %p1580_p7 = scmp.lt.s32.totalorder %s1571_s25, %s1571_s25 }
  0x58   : > { %p1574_p3 = pnand %p1572_p2, %p1815_p1  ;;  %p1581_p9 = por %p1580_p7, %p1579_p6 }
  0x5a   : > { %p1575_p5 = pneg %p1574_p3 }
  0x5c   : > { %p1582_p12 = pnand %p1581_p9, %p1575_p5 }
  0x5e   : > { %1585 = shalt.err (!%p1582_p12)
}
  0x5f   : > { %s1679_s26 = smov 64   ;;  %s1680_s12 = smov 4  }
  0x60   : > { %1327 = dma.hbm_to_vmem [thread:$0]  (!%p1803_p13), %s1964_s6, 2048, %s291_s22, [#allocation7], %s1679_s26, %s1679_s26, %s1680_s12  }
  0x61   : > { %p1988_p4 = scmp.ne.s32.totalorder %s1983_s19, 0 }
  0x62   : > { %p1989_p8 = scmp.ne.s32.totalorder (!%p1988_p4), %s1984_s20, 0 }
  0x63   : > { %326 = sbr.rel (%p1988_p4) target bundleno = 1250 (0x4e2), region = 52 }
  0x6a   : > { %1639 = dma.done.wait (%p1989_p8), [#allocation4], 2048  }
  0x6b   : > { %1641 = vsyncadd (%p1989_p8), [#allocation4], 4294965248 }
  0x6c   : > { %1643 = dma.done.wait (%p1989_p8), [#allocation7], 6144  }
  0x6d   : > { %1645 = vsyncadd (%p1989_p8), [#allocation7], 4294961152  ;;  %v1681_v0 = vmov 0   ;;  %v1408_v1 = vld [vmem:[#allocation3 + $0x4] ss:$8 sps:$4 sm:$0xff]   ;;  %p374_p13 = scmp.lt.s32.totalorder %s1664_s30, 1  ;;  %v543_v63 = vlaneseq }
  0x6e   : > { %523 = vmatprep.mubr.bf16.mxu0 %v1681_v0  ;;  %1405 = vset.pattern.permute.xlu0 %v1681_v0  ;;  %v1410_v2 = vld [vmem:[#allocation3] ss:$8 sps:$4 sm:$0xff]   ;;  %v1411_v3 = vld [vmem:[#allocation3 + $0x14] ss:$8 sps:$4 sm:$0xff]   ;;  %v1413_v4 = vld [vmem:[#allocation3 + $0x10] ss:$8 sps:$4 sm:$0xff]  }
  0x6f   : > { %491 = vmatprep.subr.bf16.mxu0 %v1408_v1  ;;  %v1414_v5 = vld [vmem:[#allocation3 + $0x24] ss:$8 sps:$4 sm:$0xff]   ;;  %v1416_v6 = vld [vmem:[#allocation3 + $0x20] ss:$8 sps:$4 sm:$0xff]   ;;  %v1417_v7 = vld [vmem:[#allocation3 + $0x34] ss:$8 sps:$4 sm:$0xff]  }
  0x70   : > { %492 = vmatpush1.bf16.msra.mxu0 %v1410_v2  ;;  %v1419_v8 = vld [vmem:[#allocation3 + $0x30] ss:$8 sps:$4 sm:$0xff]   ;;  %v1420_v9 = vld [vmem:[#allocation3 + $0x44] ss:$8 sps:$4 sm:$0xff]   ;;  %v1434_v11 = vld [vmem:[#allocation6] ss:$8 sps:$4 sm:$0xff]  }
  0x71   : > { %493 = vmatprep.subr.bf16.mxu0 %v1411_v3  ;;  %v1432_v10 = vld [vmem:[#allocation6 + $0x4] ss:$8 sps:$4 sm:$0xff]   ;;  %v1435_v12 = vld [vmem:[#allocation6 + $0x14] ss:$8 sps:$4 sm:$0xff]   ;;  %v1422_v13 = vld [vmem:[#allocation3 + $0x40] ss:$8 sps:$4 sm:$0xff]  }
  0x72   : > { %764 = vmatprep.subr.bf16.mxu1 %v1432_v10  ;;  %v1437_v14 = vld [vmem:[#allocation6 + $0x10] ss:$8 sps:$4 sm:$0xff]   ;;  %v1438_v15 = vld [vmem:[#allocation6 + $0x24] ss:$8 sps:$4 sm:$0xff]   ;;  %v1423_v16 = vld [vmem:[#allocation3 + $0x54] ss:$8 sps:$4 sm:$0xff]  }
  0x73   : > { %765 = vmatpush1.bf16.msra.mxu1 %v1434_v11  ;;  %v1425_v17 = vld [vmem:[#allocation3 + $0x50] ss:$8 sps:$4 sm:$0xff]   ;;  %v1440_v18 = vld [vmem:[#allocation6 + $0x20] ss:$8 sps:$4 sm:$0xff]   ;;  %s1879_s19 = scalar_select %p374_p13, %s1664_s30, 1  ;;  %v544_v0 = vshrl.u32 %v543_v63, 7 }
  0x74   : > { %494 = vmatpush1.bf16.msra.mxu0 %v1413_v4  ;;  %766 = vmatprep.subr.bf16.mxu1 %v1435_v12  ;;  %v1441_v19 = vld [vmem:[#allocation6 + $0x34] ss:$8 sps:$4 sm:$0xff]   ;;  %v1426_v20 = vld [vmem:[#allocation3 + $0x64] ss:$8 sps:$4 sm:$0xff]   ;;  %v1428_v21 = vld [vmem:[#allocation3 + $0x60] ss:$8 sps:$4 sm:$0xff]  }
  0x75   : > { %495 = vmatprep.subr.bf16.mxu0 %v1414_v5  ;;  %v1443_v22 = vld [vmem:[#allocation6 + $0x30] ss:$8 sps:$4 sm:$0xff]   ;;  %s1211_s20 = sshll.u32 %s1879_s19, 2  ;;  %v1444_v23 = vld [vmem:[#allocation6 + $0x44] ss:$8 sps:$4 sm:$0xff]   ;;  %s1212_s17 = sshll.u32 %s1879_s19, 3 }
  0x76   : > { %v1429_v24 = vld [vmem:[#allocation3 + $0x74] ss:$8 sps:$4 sm:$0xff]   ;;  %v1431_v25 = vld [vmem:[#allocation3 + $0x70] ss:$8 sps:$4 sm:$0xff]   ;;  %s380_s18 = scalar_lea.vmem %s1958_s0, %s1211_s20  ;;  %v1446_v26 = vld [vmem:[#allocation6 + $0x40] ss:$8 sps:$4 sm:$0xff]   ;;  %s384_s11 = scalar_lea.vmem %s1959_s1, %s1212_s17 }
  0x77   : > { %767 = vmatpush1.bf16.msra.mxu1 %v1437_v14  ;;  %v1447_v27 = vld [vmem:[#allocation6 + $0x54] ss:$8 sps:$4 sm:$0xff]   ;;  %v394_v28 = vld [vmem:[%s380_s18] sm:$0xf]  ;;  %v1449_v29 = vld [vmem:[#allocation6 + $0x50] ss:$8 sps:$4 sm:$0xff]  }
  0x78   : > { %496 = vmatpush1.bf16.msra.mxu0 %v1416_v6  ;;  %768 = vmatprep.subr.bf16.mxu1 %v1438_v15  ;;  %v1450_v30 = vld [vmem:[#allocation6 + $0x64] ss:$8 sps:$4 sm:$0xff]   ;;  %v1452_v31 = vld [vmem:[#allocation6 + $0x60] ss:$8 sps:$4 sm:$0xff]   ;;  %v1453_v32 = vld [vmem:[#allocation6 + $0x74] ss:$8 sps:$4 sm:$0xff]  }
  0x79   : > { %497 = vmatprep.subr.bf16.mxu0 %v1417_v7  ;;  %v1455_v33 = vld [vmem:[#allocation6 + $0x70] ss:$8 sps:$4 sm:$0xff]   ;;  %v1456_v34 = vld [vmem:[#allocation6 + $0x84] ss:$8 sps:$4 sm:$0xff]   ;;  %v1458_v35 = vld [vmem:[#allocation6 + $0x80] ss:$8 sps:$4 sm:$0xff]  }
  0x7a   : > { %v1459_v36 = vld [vmem:[#allocation6 + $0x94] ss:$8 sps:$4 sm:$0xff]   ;;  %v1461_v37 = vld [vmem:[#allocation6 + $0x90] ss:$8 sps:$4 sm:$0xff]   ;;  %v1462_v38 = vld [vmem:[#allocation6 + $0xa4] ss:$8 sps:$4 sm:$0xff]  }
  0x7b   : > { %769 = vmatpush1.bf16.msra.mxu1 %v1440_v18  ;;  %v1464_v39 = vld [vmem:[#allocation6 + $0xa0] ss:$8 sps:$4 sm:$0xff]   ;;  %v1465_v40 = vld [vmem:[#allocation6 + $0xb4] ss:$8 sps:$4 sm:$0xff]   ;;  %v1467_v41 = vld [vmem:[#allocation6 + $0xb0] ss:$8 sps:$4 sm:$0xff]  }
  0x7c   : > { %498 = vmatpush1.bf16.msra.mxu0 %v1419_v8  ;;  %770 = vmatprep.subr.bf16.mxu1 %v1441_v19  ;;  %v1468_v42 = vld [vmem:[#allocation6 + $0xc4] ss:$8 sps:$4 sm:$0xff]   ;;  %v1470_v43 = vld [vmem:[#allocation6 + $0xc0] ss:$8 sps:$4 sm:$0xff]   ;;  %v1471_v44 = vld [vmem:[#allocation6 + $0xd4] ss:$8 sps:$4 sm:$0xff]  }
  0x7d   : > { %499 = vmatprep.subr.bf16.mxu0 %v1420_v9  ;;  %v1473_v45 = vld [vmem:[#allocation6 + $0xd0] ss:$8 sps:$4 sm:$0xff]   ;;  %v1474_v46 = vld [vmem:[#allocation6 + $0xe4] ss:$8 sps:$4 sm:$0xff]   ;;  %v1476_v47 = vld [vmem:[#allocation6 + $0xe0] ss:$8 sps:$4 sm:$0xff]  }
  0x7e   : > { %v1477_v48 = vld [vmem:[#allocation6 + $0xf4] ss:$8 sps:$4 sm:$0xff]   ;;  %v1479_v49 = vld [vmem:[#allocation6 + $0xf0] ss:$8 sps:$4 sm:$0xff]   ;;  %v1480_v50 = vld [vmem:[#allocation8 + $0x40] sm:$0xff]   ;;  %s1682_s14 = smov 2  }
  0x7f   : > { %771 = vmatpush1.bf16.msra.mxu1 %v1443_v22  ;;  %v1481_v51 = vld [vmem:[#allocation8] sm:$0xff]   ;;  %v1482_v52 = vld [vmem:[#allocation8 + $0x48] sm:$0xff]   ;;  %v1484_v55 = vld [vmem:[#allocation8 + $0x50] sm:$0xff]   ;;  %v545_v1 = vsub.s32 0, %v544_v0  ;;  %v549_v3 = vsub.s32 1, %v544_v0  ;;  %s1683_s9 = smov 126  }
  0x80   : > { %500 = vmatpush1.bf16.msra.mxu0 %v1422_v13  ;;  %772 = vmatprep.subr.bf16.mxu1 %v1444_v23  ;;  %v1889_v53 = vld [vmem:[%s384_s11] sm:$0xff]  ;;  %v1483_v54 = vld [vmem:[#allocation8 + $0x8] sm:$0xff]   ;;  %v1485_v56 = vld [vmem:[#allocation8 + $0x10] sm:$0xff]   ;;  %v1684_v23 = vmov 2   ;;  %vm983_vm0 = vcmask 64512   ;;  %s1687_s4 = smov 112  }
  0x81   : > { %501 = vmatprep.subr.bf16.mxu0 %v1423_v16  ;;  %997 = vrot.lane.b32.xlu0 %v1889_v53, %s1682_s14  ;;  %v1486_v57 = vld [vmem:[#allocation8 + $0x58] sm:$0xff]   ;;  %v1488_v59 = vld [vmem:[#allocation8 + $0x60] sm:$0xff]   ;;  %v1490_v61 = vld [vmem:[#allocation8 + $0x68] sm:$0xff]   ;;  %s1688_s19 = smov 16   ;;  %s1689_s20 = smov 8   ;;  %vm1061_vm1 = vcmask 130048  }
  0x82   : > { %v1487_v58 = vld [vmem:[#allocation8 + $0x18] sm:$0xff]   ;;  %v1489_v60 = vld [vmem:[#allocation8 + $0x20] sm:$0xff]   ;;  %v1491_v62 = vld [vmem:[#allocation8 + $0x28] sm:$0xff]   ;;  %1403 = vset.pattern.permute.xlu1 %v1684_v23  ;;  %s371_s23 = sand.u32 1, %s1656_s28   ;;  %vm1063_vm2 = vcmask 195584   ;;  %vm1065_vm3 = vcmask 261120  }
  0x83   : > { %773 = vmatpush1.bf16.msra.mxu1 %v1446_v26  ;;  %v541_v2 = vld [vmem:[%s1961_s3] sm:$0x3]  ;;  %v1492_v19 = vld [vmem:[#allocation8 + $0x70] sm:$0xff]   ;;  %v1495_v22 = vld [vmem:[#allocation8 + $0x38] sm:$0xff]   ;;  %s1210_s21 = sshll.u32 %s371_s23, 3  ;;  %vm1067_vm4 = vcmask 326656  }
  0x84   : > { %502 = vmatpush1.bf16.msra.mxu0 %v1425_v17  ;;  %774 = vmatprep.subr.bf16.mxu1 %v1447_v27  ;;  %v546_v4 = vrot.slane %v541_v2, %v545_v1  ;;  %v550_v5 = vrot.slane %v541_v2, %v549_v3  ;;  %s1279_s18 = sshll.u32 %s1664_s30, 7  ;;  %s373_s17 = scalar_lea.vmem [#allocation9], %s1210_s21  ;;  %vm1069_vm5 = vcmask 392192  }
  0x85   : > { %503 = vmatprep.subr.bf16.mxu0 %v1426_v20  ;;  %v1493_v20 = vld [vmem:[#allocation8 + $0x30] sm:$0xff]   ;;  %s1086_s22 = sshll.u32 %s373_s17, 4  ;;  %s1911_s14 = scalar_lea.hbm %s1966_s8, %s1279_s18  ;;  %s1913_s22 = int_to_ptr.vmem [resolvable:$true] %s1086_s22 }
  0x86   : > { %s1073_s30 = scalar_lea.sflag [#allocation5], %s371_s23  ;;  %s1586_s16 = scalar_lea.vmem %s1913_s22, 128 }
  0x87   : > { %775 = vmatpush1.bf16.msra.mxu1 %v1449_v29  ;;  %p1587_p1 = scmp.ne.s32.totalorder %s1913_s22, %s1586_s16  ;;  %p1990_p10 = scmp.ne.s32.totalorder %s1979_s15, 0 }
  0x88   : > { %504 = vmatpush1.bf16.msra.mxu0 %v1428_v21  ;;  %776 = vmatprep.subr.bf16.mxu1 %v1450_v30  ;;  %v1494_v21 = vld [vmem:[#allocation8 + $0x78] sm:$0xff]   ;;  %s1690_s24 = smov [#allocation9]  }
  0x89   : > { %505 = vmatprep.subr.bf16.mxu0 %v1429_v24  ;;  %v1685_v24 = vmov 3   ;;  %p1588_p11 = pnand %p1587_p1, %p1990_p10 }
  0x8b   : > { %777 = vmatpush1.bf16.msra.mxu1 %v1452_v31  ;;  %p1589_p0 = pneg %p1588_p11 }
  0x8c   : > { %506 = vmatpush1.bf16.msra.mxu0 %v1431_v25  ;;  %778 = vmatprep.subr.bf16.mxu1 %v1453_v32  ;;  %v1686_v25 = vmov 1  }
  0x8d   : > { %1282 = vmatprep.subr.bf16.mxu0 %v1480_v50 }
  0x8f   : > { %524 = vmatmul.mubr.bf16.vlgmr.msra.gmra.mrb[0].mxu0 %v394_v28  ;;  %779 = vmatpush1.bf16.msra.mxu1 %v1455_v33  ;;  %v559_v28 = vld [vmem:[%s1963_s5] sm:$0x3] }
  0x90   : > { %780 = vmatprep.subr.bf16.mxu1 %v1456_v34  ;;  %1283 = vmatpush3.bf16.msra.mxu0 %v1481_v51  ;;  %v597_v29 = vrot.slane %v559_v28, %v545_v1  ;;  %v601_v30 = vrot.slane %v559_v28, %v549_v3 }
  0x91   : > { %1284 = vmatprep.subr.bf16.mxu0 %v1482_v52 }
  0x93   : > { %781 = vmatpush1.bf16.msra.mxu1 %v1458_v35 }
  0x94   : > { %782 = vmatprep.subr.bf16.mxu1 %v1459_v36  ;;  %1285 = vmatpush3.bf16.msra.mxu0 %v1483_v54 }
  0x95   : > { %1286 = vmatprep.subr.bf16.mxu0 %v1484_v55 }
  0x97   : > { %783 = vmatpush1.bf16.msra.mxu1 %v1461_v37 }
  0x98   : > { %784 = vmatprep.subr.bf16.mxu1 %v1462_v38  ;;  %1287 = vmatpush3.bf16.msra.mxu0 %v1485_v56 }
  0x99   : > { %1288 = vmatprep.subr.bf16.mxu0 %v1486_v57 }
  0x9b   : > { %785 = vmatpush1.bf16.msra.mxu1 %v1464_v39 }
  0x9c   : > { %786 = vmatprep.subr.bf16.mxu1 %v1465_v40  ;;  %1289 = vmatpush3.bf16.msra.mxu0 %v1487_v58 }
  0x9d   : > { %1290 = vmatprep.subr.bf16.mxu0 %v1488_v59 }
  0x9f   : > { %787 = vmatpush1.bf16.msra.mxu1 %v1467_v41 }
  0xa0   : > { %788 = vmatprep.subr.bf16.mxu1 %v1468_v42  ;;  %1291 = vmatpush3.bf16.msra.mxu0 %v1489_v60  ;;  %v1261_v42 = vld [vmem:[%s1965_s7] ss:$0 sm:$0xff] }
  0xa1   : > { %1292 = vmatprep.subr.bf16.mxu0 %v1490_v61 }
  0xa3   : > { %789 = vmatpush1.bf16.msra.mxu1 %v1470_v43 }
  0xa4   : > { %790 = vmatprep.subr.bf16.mxu1 %v1471_v44  ;;  %1293 = vmatpush3.bf16.msra.mxu0 %v1491_v62 }
  0xa5   : > { %1294 = vmatprep.subr.bf16.mxu0 %v1492_v19 }
  0xa7   : > { %791 = vmatpush1.bf16.msra.mxu1 %v1473_v45 }
  0xa8   : > { %792 = vmatprep.subr.bf16.mxu1 %v1474_v46  ;;  %1295 = vmatpush3.bf16.msra.mxu0 %v1493_v20 }
  0xa9   : > { %1296 = vmatprep.subr.bf16.mxu0 %v1494_v21 }
  0xab   : > { %793 = vmatpush1.bf16.msra.mxu1 %v1476_v47 }
  0xac   : > { %794 = vmatprep.subr.bf16.mxu1 %v1477_v48  ;;  %1297 = vmatpush3.bf16.msra.mxu0 %v1495_v22 }
  0xaf   : > { %795 = vmatpush1.bf16.msra.mxu1 %v1479_v49 }
  0xf3   : > { %v998_v6 = vpop.permute.xlu0 %997 }
  0xf4   : > { %v1000_v7 = vsub.f32 %v1889_v53, %v998_v6 }
  0xf6   : > { %v1001_v11 = vmul.f32 0.5, %v1000_v7 }
  0xf8   : > { %1003 = vrot.lane.b32.xlu1 %v1001_v11, %s1683_s9  ;;  %s1590_s9 = sshll.u32 %s1690_s24, 4  ;;  %s1591_s9 = int_to_ptr.vmem [resolvable:$false] %s1590_s9 }
  0xf9   : > { %s1592_s25 = scalar_lea.vmem %s1591_s9, 256  ;;  %p1593_p2 = scmp.lt.s32.totalorder %s1913_s22, %s1591_s9 }
  0xfa   : > { %p1594_p3 = scmp.lt.s32.totalorder %s1592_s25, %s1586_s16 }
  0xfc   : > { %1010 = vperm.xlu1 %1403, %v1000_v7   ;;  %p1595_p5 = por %p1594_p3, %p1593_p2 }
  0xfe   : > { %p1596_p6 = pnand %p1595_p5, %p1589_p0 }
 0x100   : > { %1404 = vset.pattern.permute.xlu1 %v1685_v24 }
 0x101   : > { %1021 = vperm.xlu1 %1404, %v1000_v7  }
 0x105   : > { %1406 = vset.pattern.permute.xlu1 %v1686_v25 }
 0x162   : > { %v525_v8 = vpop.f32.mrb[0].mxu0 }
 0x163   : > { %v553_v9 = vadd.f32 %v546_v4, %v525_v8  ;;  %v527_v10 = vpop.f32.mrb[1].mxu0 }
 0x164   : > { %v554_v12 = vadd.f32 %v550_v5, %v527_v10  ;;  %v529_v13 = vpop.f32.mrb[2].mxu0 }
 0x165   : > { %v555_v14 = vmax.f32 %v553_v9, 0.0  ;;  %v530_v15 = vpop.f32.mrb[3].mxu0 }
 0x166   : > { %v556_v16 = vmax.f32 %v554_v12, 0.0 }
 0x167   : > { %v557_v18 = vpack.c.bf16 %v555_v14, %v555_v14 }
 0x168   : > { %v558_v17 = vpack.c.bf16 %v556_v16, %v556_v16 }
 0x16a   : > { %796 = vmatprep.mubr.bf16.mxu1 %v558_v17  ;;  %v1004_v26 = vpop.permute.xlu1 %1003 }
 0x16b   : > { %797 = vmatmul.mubr.bf16.vlgmr.msra.gmra.mrb[0].mxu1 %v557_v18  ;;  %v1006_v27 = vadd.f32 %v1004_v26, %v1889_v53 }
 0x16d   : > { %1026 = vperm.xlu1 %1406, %v1006_v27  }
 0x17b   : > { %v1011_v52 = vpop.permute.xlu1 %1010 }
 0x180   : > { %v1022_v60 = vpop.permute.xlu1 %1021 }
 0x1ec   : > { %v1027_v63 = vpop.permute.xlu1 %1026 }
 0x23e   : > { %v798_v31 = vpop.f32.mrb[0].mxu1 }
 0x23f   : > { %v799_v32 = vadd.f32 %v798_v31, %v597_v29  ;;  %v800_v33 = vpop.f32.mrb[1].mxu1 }
 0x240   : > { %v801_v34 = vadd.f32 %v800_v33, %v601_v30  ;;  %v802_v35 = vpop.f32.mrb[2].mxu1 }
 0x241   : > { %v805_v36 = vmax.f32 %v799_v32, 0.0  ;;  %v803_v37 = vpop.f32.mrb[3].mxu1 }
 0x242   : > { %v806_v38 = vmax.f32 %v801_v34, 0.0 }
 0x243   : > { %v807_v40 = vpack.c.bf16 %v805_v36, %v805_v36 }
 0x244   : > { %v808_v39 = vpack.c.bf16 %v806_v38, %v806_v38 }
 0x246   : > { %975 = vmatprep.mubr.bf16.mxu0 %v808_v39 }
 0x247   : > { %976 = vmatmul.mubr.bf16.vlgmr.msra.gmra.mrb[4].mxu0 %v807_v40 }
 0x31a   : > { %v1298_v41 = vpop.f32.mrb[4].mxu0 }
 0x31b   : > { %v1299_v43 = vpop.f32.mrb[5].mxu0 }
 0x31c   : > { %v1300_v44 = vadd.f32 %v1299_v43, %v1298_v41  ;;  %v1301_v45 = vpop.f32.mrb[6].mxu0 }
 0x31d   : > { %v1302_v46 = vpop.f32.mrb[7].mxu0 }
 0x31e   : > { %v978_v47 = vadd.f32 %v1300_v44, %v1261_v42 }
 0x320   : > { %v1007_v48 = vmin.f32 %v978_v47, 4.1351666  ;;  %v984_v49 = vsel %vm983_vm0, %v978_v47, -inf  ;;  %v1024_v1 = vmul.f32 %v1022_v60, %v978_v47  ;;  %v1013_v7 = vmul.f32 %v1011_v52, %v978_v47 }
 0x321   : > { %985 = vmax.xlane.f32.xlu0 %v984_v49 }
 0x322   : > { %v1030_v50 = vmul.f32 1.442695, %v1007_v48  ;;  %v1029_v3 = vadd.f32 %v1027_v63, %v1024_v1 }
 0x324   : > { %1496 = vpow2.f32 %v1030_v50 }
 0x32e   : > { %v1497_v51 = vpop.eup %1496 }
 0x32f   : > { %v1032_v53 = vmul.f32 %v1497_v51, %v1011_v52  ;;  %v1033_v61 = vmul.f32 %v1497_v51, %v1022_v60 }
 0x331   : > { %v1034_v54 = vmul.f32 0.5, %v1032_v53  ;;  %v1040_v62 = vmul.f32 0.5, %v1033_v61 }
 0x333   : > { %1036 = vrot.lane.b32.xlu1 %v1034_v54, %s1687_s4 }
 0x337   : > { %1016 = vperm.xlu0 %1405, %v1006_v27  }
 0x33b   : > { %1407 = vset.pattern.permute.xlu0 %v1686_v25 }
 0x3a5   : > { %v1037_v0 = vpop.permute.xlu1 %1036 }
 0x3ae   : > { %v986_v55 = vpop.xlane.xlu0 %985 }
 0x3af   : > { %v987_v56 = vsub.f32 %v978_v47, %v986_v55 }
 0x3b1   : > { %v988_v57 = vmul.f32 1.442695, %v987_v56 }
 0x3b3   : > { %1498 = vpow2.f32 %v988_v57 }
 0x3b6   : > { %v1017_v6 = vpop.permute.xlu0 %1016 }
 0x3b7   : > { %v1019_v9 = vadd.f32 %v1017_v6, %v1013_v7 }
 0x3b9   : > { %v1046_v11 = vadd.f32 %v1037_v0, %v1019_v9  ;;  %v1039_v12 = vsub.f32 %v1019_v9, %v1037_v0 }
 0x3bd   : > { %v1499_v58 = vpop.eup %1498 }
 0x3be   : > { %v990_v59 = vsel %vm983_vm0, %v1499_v58, 0.0 }
 0x3bf   : > { %991 = vadd.xlane.f32.xlu1 %v990_v59 }
 0x3d0   : > { %1042 = vrot.lane.b32.xlu1 %v1040_v62, %s1687_s4 }
 0x44c   : > { %v992_v2 = vpop.xlane.xlu1 %991 }
 0x44d   : > { %1500 = vrcp.f32 %v992_v2 }
 0x450   : > { %v1043_v4 = vpop.permute.xlu1 %1042 }
 0x451   : > { %v1047_v5 = vadd.f32 %v1043_v4, %v1029_v3  ;;  %v1045_v14 = vsub.f32 %v1029_v3, %v1043_v4 }
 0x453   : > { %1057 = vrot.lane.b32.xlu0 %v1047_v5, %s1688_s19 }
 0x457   : > { %v1501_v8 = vpop.eup %1500 }
 0x458   : > { %v994_v10 = vmul.f32 %v1501_v8, %v1499_v58 }
 0x45a   : > { %1049 = vrot.lane.b32.xlu1 %v994_v10, %s1689_s20 }
 0x45e   : > { %1053 = vrot.lane.b32.xlu1 %v1046_v11, %s1688_s19 }
 0x4c5   : > { %v1058_v19 = vpop.permute.xlu0 %1057 }
 0x4cc   : > { %v1050_v13 = vpop.permute.xlu1 %1049 }
 0x4cd   : > { %v1060_v15 = vsel %vm983_vm0, %v978_v47, %v1050_v13 }
 0x4ce   : > { %v1062_v16 = vsel %vm1061_vm1, %v1060_v15, %v1039_v12 }
 0x4cf   : > { %v1064_v17 = vsel %vm1063_vm2, %v1062_v16, %v1045_v14 }
 0x4d0   : > { %v1054_v18 = vpop.permute.xlu1 %1053 }
 0x4d1   : > { %v1066_v20 = vsel %vm1065_vm3, %v1064_v17, %v1054_v18 }
 0x4d2   : > { %v1068_v21 = vsel %vm1067_vm4, %v1066_v20, %v1058_v19 }
 0x4d3   : > { %v1070_v22 = vsel %vm1069_vm5, %v1068_v21, 0.0 }
 0x4d4   : > { %1071 = vst [vmem:[%s373_s17] sm:$0xff] %v1070_v22 }
 0x4d5   : > { %1599 = shalt.err (!%p1596_p6)
}
 0x4d6   : > { %s1600_s26 = scalar_lea.hbm %s1911_s14, 128  ;;  %s1604_s4 = scalar_lea.hbm %s1966_s8, 256 }
 0x4d7   : > { %p1601_p7 = scmp.ne.s32.totalorder %s1911_s14, %s1600_s26  ;;  %p1605_p4 = scmp.lt.u32.totalorder %s1911_s14, %s1966_s8 }
 0x4d8   : > { %p1606_p8 = scmp.lt.u32.totalorder %s1604_s4, %s1600_s26  ;;  %p1608_p1 = scmp.lt.u32.totalorder %s1600_s26, %s1911_s14 }
 0x4d9   : > { %p1602_p9 = pnand %p1601_p7, %p1990_p10 }
 0x4da   : > { %p1607_p13 = por %p1606_p8, %p1605_p4 }
 0x4db   : > { %p1603_p12 = pneg %p1602_p9 }
 0x4dc   : > { %p1609_p11 = por %p1608_p1, %p1607_p13 }
 0x4de   : > { %p1610_p0 = pnand %p1609_p11, %p1603_p12 }
 0x4e0   : > { %1613 = shalt.err (!%p1610_p0)
}
 0x4e1   : > { %1316 = dma.vmem_to_hbm [thread:$0]  (%p1990_p10), %s1913_s22, 128, %s1911_s14, %s1073_s30  }
 0x4e2 PF: > { %s1991_s23 = sld [smem:[#allocation16_spill]]  ;;  %p1338_p2 = scmp.ge.s32.totalorder %s1672_s10, 2 }
 0x4e3   : > { %s1098_s21 = sand.u32 1, %s1652_s27  }
 0x4e4   : > { %s1099_s18 = scalar_lea.sflag [#allocation5], %s1098_s21 }
 0x4e8   : > { %p1992_p3 = scmp.ne.s32.totalorder %s1991_s23, 0 }
 0x4ea   : > { %p1329_p5 = pnand %p1338_p2, %p1992_p3 }
 0x4ec   : > { %1647 = dma.done.wait (!%p1329_p5), %s1099_s18, 128  }
 0x4ed   : > { %1649 = vsyncadd (!%p1329_p5), %s1099_s18, 4294967168  ;;  %s23_s10 = sadd.s32 1, %s1672_s10   ;;  %s1993_s17 = sld [smem:[#allocation13_spill]] }
 0x4ee   : > { %p20_p6 = scmp.ge.s32.totalorder %s23_s10, 4   ;;  %s1994_s29 = sld [smem:[#allocation17_spill]] }
 0x4ef   : > { %s1995_s30 = sld [smem:[#allocation14_spill]]  ;;  %s1996_s9 = sld [smem:[#allocation15_spill]] }
 0x4f0   : > { %s1997_s27 = smov %s1656_s28  ;;  %22 = sbr.rel (!%p20_p6) target bundleno = 8 (0x8), region = 111 }
 0x4f3   : > { %s1998_s28 = smov %s1993_s17 }
 0x4f7   :  { %1104 = vsyncpa [#allocation4], 1 }
 0x4f8   :  { %1106 = vsyncpa [#allocation4 + $0x1], 1 }
 0x4f9   :  { %1107 = vsyncpa [#allocation7], 1 }
 0x4fa   :  { %1108 = vsyncpa [#allocation5], 1 }
 0x4fb   :  { %1110 = vsyncpa [#allocation5 + $0x1], 1 }

</bundles_post_ra>
